<compile_context>
chip_gen: v7x
topology: tpu7x:2x2x1
jax: 0.10.0
libtpu: 0.0.40
codegen_flags: <defaults>
</compile_context>

<pallas_src>
import functools

import jax
import jax.numpy as jnp
from jax.experimental import pallas as pl
from jax.experimental.pallas import tpu as pltpu


def _equalized_scales(input_channels, kernel_size, numMul, increaseWeightScale, lrmul):
    """Mirrors EqualizedConv2d.__init__ runtime scaling (weightScale, b_mul)."""
    valScale = (numMul * (input_channels * kernel_size ** 2)) ** -0.5
    if increaseWeightScale:
        weightScale = valScale * lrmul
    else:
        weightScale = lrmul
    return float(weightScale), float(lrmul)


def _eq_conv_kernel(x_ref, w_ref, b_ref, o_ref, *, K, Wp, L):
    # x_ref: (Cin, Lp)        zero-padded, spatially-flattened input (one image)
    # w_ref: (K*K, Cout, Cin) per-tap weight matrices (already scaled)
    # b_ref: (Cout, 1)        scaled bias column
    # o_ref: (Cout, L)        L = Ho * Wp  (flattened output rows at padded width)
    x = x_ref[...]
    acc = jnp.zeros(o_ref.shape, jnp.float32)
    for dy in range(K):                      # static unrolled K*K tap loop
        for dx in range(K):
            t = dy * K + dx
            off = dy * Wp + dx               # static contiguous lane-dim shift
            acc += jnp.dot(
                w_ref[t], x[:, off:off + L],
                preferred_element_type=jnp.float32,
                precision=jax.lax.Precision.HIGHEST,
            )
    o_ref[...] = (acc + b_ref[...]).astype(o_ref.dtype)


def equalized_conv2d(x, weight, bias=None, *, numMul=2 ** 0.5,
                     increaseWeightScale=False, lrmul=1.0):
    """Pallas TPU implementation of EqualizedConv2d.forward (default config)."""
    # TODO(synk): upscale=True (Upscale2d), downscale=True (blur Downscale2d) and
    # custom `intermediate` branches are not implemented; the default constructor
    # leaves all of them disabled, so forward == conv2d(scaled W) + scaled bias.
    N, Cin, H, W = x.shape
    Cout, Cin_w, K, K2 = weight.shape
    assert Cin_w == Cin and K == K2, "weight must be (Cout, Cin, K, K)"

    weightScale, b_mul = _equalized_scales(Cin, K, numMul, increaseWeightScale, lrmul)

    p = K // 2                               # PyTorch: padding = kernel_size // 2
    Hp, Wp = H + 2 * p, W + 2 * p
    Ho, Wo = Hp - K + 1, Wp - K + 1          # == H, W for odd K
    L = Ho * Wp                              # flattened output length (padded width)
    Lp = Hp * Wp + (K - 1)                   # flattened input length (+ guard tail)

    # NCHW-native prep: zero-pad + flatten spatial dims (no transposes anywhere).
    x_flat = jnp.pad(x.astype(jnp.float32), ((0, 0), (0, 0), (p, p), (p, p)))
    x_flat = x_flat.reshape(N, Cin, Hp * Wp)
    x_flat = jnp.pad(x_flat, ((0, 0), (0, 0), (0, K - 1)))

    # Per-tap (Cout, Cin) matrices, pre-scaled exactly as the PyTorch forward does
    # (weight * weightScale): a tiny parameter-sized op, not an activation pass.
    w_taps = (jnp.transpose(weight, (2, 3, 0, 1)).reshape(K * K, Cout, Cin)
              * weightScale).astype(jnp.float32)
    if bias is None:
        b_col = jnp.zeros((Cout, 1), jnp.float32)
    else:
        b_col = (bias.astype(jnp.float32) * b_mul).reshape(Cout, 1)

    # VMEM sizing: whole-image in/out blocks, double-buffered; cap at v7x's 64 MiB.
    block_bytes = 4 * 2 * (Cin * Lp + Cout * L) + 4 * (K * K * Cout * Cin + Cout)
    vmem_limit = int(min(max(2 * block_bytes, 32 * 2 ** 20), 64 * 2 ** 20))
    # TODO(synk): for very large feature maps (whole-image block > ~12 MiB) add a
    # second grid axis over row tiles with a (K-1)-row halo.

    kernel = functools.partial(_eq_conv_kernel, K=K, Wp=Wp, L=L)
    out_flat = pl.pallas_call(
        kernel,
        out_shape=jax.ShapeDtypeStruct((N, Cout, L), jnp.float32),
        grid=(N,),
        in_specs=[
            pl.BlockSpec((None, Cin, Lp), lambda n: (n, 0, 0)),       # one image
            pl.BlockSpec((K * K, Cout, Cin), lambda n: (0, 0, 0)),    # all taps
            pl.BlockSpec((Cout, 1), lambda n: (0, 0)),                # bias column
        ],
        out_specs=pl.BlockSpec((None, Cout, L), lambda n: (n, 0, 0)),
        compiler_params=pltpu.CompilerParams(
            dimension_semantics=("parallel",),
            vmem_limit_bytes=vmem_limit,
        ),
    )(x_flat, w_taps, b_col)

    # Reshape is layout-preserving (free); the slice drops the Wp-Wo junk columns
    # produced by the flattened-shift trick.
    return out_flat.reshape(N, Cout, Ho, Wp)[:, :, :, :Wo]


if __name__ == "__main__":
    key = jax.random.PRNGKey(0)
    k_x, k_w, k_b = jax.random.split(key, 3)

    N, Cin, H, W = 2, 4, 16, 16
    Cout, K = 8, 3
    numMul, lrmul = 2 ** 0.5, 1.0

    weightScale, b_mul = _equalized_scales(Cin, K, numMul, False, lrmul)
    init_std = ((numMul * (Cin * K ** 2)) ** -0.5) / lrmul     # valScale / lrmul

    x = jax.random.normal(k_x, (N, Cin, H, W), dtype=jnp.float32)
    weight = jax.random.normal(k_w, (Cout, Cin, K, K), dtype=jnp.float32) * init_std
    bias = 0.1 * jax.random.normal(k_b, (Cout,), dtype=jnp.float32)

    y = equalized_conv2d(x, weight, bias, numMul=numMul, lrmul=lrmul)
    y = jax.block_until_ready(y)

    # Pure-JAX reference of EqualizedConv2d.forward (default path).
    ref = jax.lax.conv_general_dilated(
        x, weight * weightScale, window_strides=(1, 1),
        padding=[(K // 2, K // 2), (K // 2, K // 2)],
        dimension_numbers=("NCHW", "OIHW", "NCHW"),
        precision=jax.lax.Precision.HIGHEST)
    ref = ref + (bias * b_mul)[None, :, None, None]

    assert y.shape == (N, Cout, H, W), y.shape
    assert y.dtype == jnp.float32
    max_err = float(jnp.max(jnp.abs(y - ref)))
    assert jnp.allclose(y, ref, atol=1e-4, rtol=1e-4), max_err
    print("KERNEL_OK")
</pallas_src>

<mosaic_0001>
module attributes {stable_mosaic.version = 11 : i64} {
  func.func @_eq_conv_kernel(%arg0: i32, %arg1: memref<1x4x326xf32, #tpu.memory_space<vmem>>, %arg2: memref<9x8x4xf32, #tpu.memory_space<vmem>>, %arg3: memref<8x1xf32, #tpu.memory_space<vmem>>, %arg4: memref<1x8x288xf32, #tpu.memory_space<vmem>>) attributes {dimension_semantics = [#tpu.dimension_semantics<parallel>], iteration_bounds = array<i64: 2>, scalar_prefetch = 0 : i64, scratch_operands = 0 : i64, tpu.core_type = #tpu.core_type<tc>, window_params = [{transform_indices = @transform_0, window_bounds = array<i64: 1, 4, 326>}, {pipeline_mode = #tpu.pipeline_mode<synchronous>, transform_indices = @transform_1, window_bounds = array<i64: 9, 8, 4>}, {pipeline_mode = #tpu.pipeline_mode<synchronous>, transform_indices = @transform_2, window_bounds = array<i64: 8, 1>}, {transform_indices = @transform_3, window_bounds = array<i64: 1, 8, 288>}]} {
    %c0 = arith.constant 0 : index
    %c0_0 = arith.constant 0 : index
    %c0_1 = arith.constant 0 : index
    %0 = vector.load %arg1[%c0, %c0_0, %c0_1] : memref<1x4x326xf32, #tpu.memory_space<vmem>>, vector<1x4x326xf32>
    %1 = vector.shape_cast %0 : vector<1x4x326xf32> to vector<4x326xf32>
    %cst = arith.constant 0.000000e+00 : f32
    %2 = vector.broadcast %cst : f32 to vector<8x288xf32>
    %c0_2 = arith.constant 0 : index
    %c0_3 = arith.constant 0 : index
    %c0_4 = arith.constant 0 : index
    %3 = vector.load %arg2[%c0_2, %c0_3, %c0_4] : memref<9x8x4xf32, #tpu.memory_space<vmem>>, vector<1x8x4xf32>
    %4 = vector.shape_cast %3 : vector<1x8x4xf32> to vector<8x4xf32>
    %5 = vector.extract_strided_slice %1 {offsets = [0, 0], sizes = [4, 288], strides = [1, 1]} : vector<4x326xf32> to vector<4x288xf32>
    %cst_5 = arith.constant dense<0.000000e+00> : vector<8x288xf32>
    %6 = tpu.matmul %4, %5, %cst_5 {dimension_numbers = #tpu.dot_dimension_numbers<[1], [0], [0], [1], [0, 0, 1, 1], [], []>, precision = #tpu.contract_precision<fp32>} : vector<8x4xf32>, vector<4x288xf32>, vector<8x288xf32> -> vector<8x288xf32>
    %7 = arith.addf %2, %6 : vector<8x288xf32>
    %c1 = arith.constant 1 : index
    %c0_6 = arith.constant 0 : index
    %c0_7 = arith.constant 0 : index
    %8 = vector.load %arg2[%c1, %c0_6, %c0_7] : memref<9x8x4xf32, #tpu.memory_space<vmem>>, vector<1x8x4xf32>
    %9 = vector.shape_cast %8 : vector<1x8x4xf32> to vector<8x4xf32>
    %10 = vector.extract_strided_slice %1 {offsets = [0, 1], sizes = [4, 288], strides = [1, 1]} : vector<4x326xf32> to vector<4x288xf32>
    %cst_8 = arith.constant dense<0.000000e+00> : vector<8x288xf32>
    %11 = tpu.matmul %9, %10, %cst_8 {dimension_numbers = #tpu.dot_dimension_numbers<[1], [0], [0], [1], [0, 0, 1, 1], [], []>, precision = #tpu.contract_precision<fp32>} : vector<8x4xf32>, vector<4x288xf32>, vector<8x288xf32> -> vector<8x288xf32>
    %12 = arith.addf %7, %11 : vector<8x288xf32>
    %c2 = arith.constant 2 : index
    %c0_9 = arith.constant 0 : index
    %c0_10 = arith.constant 0 : index
    %13 = vector.load %arg2[%c2, %c0_9, %c0_10] : memref<9x8x4xf32, #tpu.memory_space<vmem>>, vector<1x8x4xf32>
    %14 = vector.shape_cast %13 : vector<1x8x4xf32> to vector<8x4xf32>
    %15 = vector.extract_strided_slice %1 {offsets = [0, 2], sizes = [4, 288], strides = [1, 1]} : vector<4x326xf32> to vector<4x288xf32>
    %cst_11 = arith.constant dense<0.000000e+00> : vector<8x288xf32>
    %16 = tpu.matmul %14, %15, %cst_11 {dimension_numbers = #tpu.dot_dimension_numbers<[1], [0], [0], [1], [0, 0, 1, 1], [], []>, precision = #tpu.contract_precision<fp32>} : vector<8x4xf32>, vector<4x288xf32>, vector<8x288xf32> -> vector<8x288xf32>
    %17 = arith.addf %12, %16 : vector<8x288xf32>
    %c3 = arith.constant 3 : index
    %c0_12 = arith.constant 0 : index
    %c0_13 = arith.constant 0 : index
    %18 = vector.load %arg2[%c3, %c0_12, %c0_13] : memref<9x8x4xf32, #tpu.memory_space<vmem>>, vector<1x8x4xf32>
    %19 = vector.shape_cast %18 : vector<1x8x4xf32> to vector<8x4xf32>
    %20 = vector.extract_strided_slice %1 {offsets = [0, 18], sizes = [4, 288], strides = [1, 1]} : vector<4x326xf32> to vector<4x288xf32>
    %cst_14 = arith.constant dense<0.000000e+00> : vector<8x288xf32>
    %21 = tpu.matmul %19, %20, %cst_14 {dimension_numbers = #tpu.dot_dimension_numbers<[1], [0], [0], [1], [0, 0, 1, 1], [], []>, precision = #tpu.contract_precision<fp32>} : vector<8x4xf32>, vector<4x288xf32>, vector<8x288xf32> -> vector<8x288xf32>
    %22 = arith.addf %17, %21 : vector<8x288xf32>
    %c4 = arith.constant 4 : index
    %c0_15 = arith.constant 0 : index
    %c0_16 = arith.constant 0 : index
    %23 = vector.load %arg2[%c4, %c0_15, %c0_16] : memref<9x8x4xf32, #tpu.memory_space<vmem>>, vector<1x8x4xf32>
    %24 = vector.shape_cast %23 : vector<1x8x4xf32> to vector<8x4xf32>
    %25 = vector.extract_strided_slice %1 {offsets = [0, 19], sizes = [4, 288], strides = [1, 1]} : vector<4x326xf32> to vector<4x288xf32>
    %cst_17 = arith.constant dense<0.000000e+00> : vector<8x288xf32>
    %26 = tpu.matmul %24, %25, %cst_17 {dimension_numbers = #tpu.dot_dimension_numbers<[1], [0], [0], [1], [0, 0, 1, 1], [], []>, precision = #tpu.contract_precision<fp32>} : vector<8x4xf32>, vector<4x288xf32>, vector<8x288xf32> -> vector<8x288xf32>
    %27 = arith.addf %22, %26 : vector<8x288xf32>
    %c5 = arith.constant 5 : index
    %c0_18 = arith.constant 0 : index
    %c0_19 = arith.constant 0 : index
    %28 = vector.load %arg2[%c5, %c0_18, %c0_19] : memref<9x8x4xf32, #tpu.memory_space<vmem>>, vector<1x8x4xf32>
    %29 = vector.shape_cast %28 : vector<1x8x4xf32> to vector<8x4xf32>
    %30 = vector.extract_strided_slice %1 {offsets = [0, 20], sizes = [4, 288], strides = [1, 1]} : vector<4x326xf32> to vector<4x288xf32>
    %cst_20 = arith.constant dense<0.000000e+00> : vector<8x288xf32>
    %31 = tpu.matmul %29, %30, %cst_20 {dimension_numbers = #tpu.dot_dimension_numbers<[1], [0], [0], [1], [0, 0, 1, 1], [], []>, precision = #tpu.contract_precision<fp32>} : vector<8x4xf32>, vector<4x288xf32>, vector<8x288xf32> -> vector<8x288xf32>
    %32 = arith.addf %27, %31 : vector<8x288xf32>
    %c6 = arith.constant 6 : index
    %c0_21 = arith.constant 0 : index
    %c0_22 = arith.constant 0 : index
    %33 = vector.load %arg2[%c6, %c0_21, %c0_22] : memref<9x8x4xf32, #tpu.memory_space<vmem>>, vector<1x8x4xf32>
    %34 = vector.shape_cast %33 : vector<1x8x4xf32> to vector<8x4xf32>
    %35 = vector.extract_strided_slice %1 {offsets = [0, 36], sizes = [4, 288], strides = [1, 1]} : vector<4x326xf32> to vector<4x288xf32>
    %cst_23 = arith.constant dense<0.000000e+00> : vector<8x288xf32>
    %36 = tpu.matmul %34, %35, %cst_23 {dimension_numbers = #tpu.dot_dimension_numbers<[1], [0], [0], [1], [0, 0, 1, 1], [], []>, precision = #tpu.contract_precision<fp32>} : vector<8x4xf32>, vector<4x288xf32>, vector<8x288xf32> -> vector<8x288xf32>
    %37 = arith.addf %32, %36 : vector<8x288xf32>
    %c7 = arith.constant 7 : index
    %c0_24 = arith.constant 0 : index
    %c0_25 = arith.constant 0 : index
    %38 = vector.load %arg2[%c7, %c0_24, %c0_25] : memref<9x8x4xf32, #tpu.memory_space<vmem>>, vector<1x8x4xf32>
    %39 = vector.shape_cast %38 : vector<1x8x4xf32> to vector<8x4xf32>
    %40 = vector.extract_strided_slice %1 {offsets = [0, 37], sizes = [4, 288], strides = [1, 1]} : vector<4x326xf32> to vector<4x288xf32>
    %cst_26 = arith.constant dense<0.000000e+00> : vector<8x288xf32>
    %41 = tpu.matmul %39, %40, %cst_26 {dimension_numbers = #tpu.dot_dimension_numbers<[1], [0], [0], [1], [0, 0, 1, 1], [], []>, precision = #tpu.contract_precision<fp32>} : vector<8x4xf32>, vector<4x288xf32>, vector<8x288xf32> -> vector<8x288xf32>
    %42 = arith.addf %37, %41 : vector<8x288xf32>
    %c8 = arith.constant 8 : index
    %c0_27 = arith.constant 0 : index
    %c0_28 = arith.constant 0 : index
    %43 = vector.load %arg2[%c8, %c0_27, %c0_28] : memref<9x8x4xf32, #tpu.memory_space<vmem>>, vector<1x8x4xf32>
    %44 = vector.shape_cast %43 : vector<1x8x4xf32> to vector<8x4xf32>
    %45 = vector.extract_strided_slice %1 {offsets = [0, 38], sizes = [4, 288], strides = [1, 1]} : vector<4x326xf32> to vector<4x288xf32>
    %cst_29 = arith.constant dense<0.000000e+00> : vector<8x288xf32>
    %46 = tpu.matmul %44, %45, %cst_29 {dimension_numbers = #tpu.dot_dimension_numbers<[1], [0], [0], [1], [0, 0, 1, 1], [], []>, precision = #tpu.contract_precision<fp32>} : vector<8x4xf32>, vector<4x288xf32>, vector<8x288xf32> -> vector<8x288xf32>
    %47 = arith.addf %42, %46 : vector<8x288xf32>
    %c0_30 = arith.constant 0 : index
    %c0_31 = arith.constant 0 : index
    %48 = vector.load %arg3[%c0_30, %c0_31] : memref<8x1xf32, #tpu.memory_space<vmem>>, vector<8x1xf32>
    %49 = vector.broadcast %48 : vector<8x1xf32> to vector<8x288xf32>
    %50 = arith.addf %47, %49 : vector<8x288xf32>
    %c0_32 = arith.constant 0 : index
    %c0_33 = arith.constant 0 : index
    %c0_34 = arith.constant 0 : index
    %51 = vector.load %arg4[%c0_32, %c0_33, %c0_34] : memref<1x8x288xf32, #tpu.memory_space<vmem>>, vector<1x8x288xf32>
    %52 = vector.shape_cast %51 : vector<1x8x288xf32> to vector<8x288xf32>
    %53 = vector.shape_cast %50 : vector<8x288xf32> to vector<1x8x288xf32>
    tpu.vector_store %arg4[%c0_32, %c0_33, %c0_34], %53 {strides = array<i32>} : memref<1x8x288xf32, #tpu.memory_space<vmem>>, vector<1x8x288xf32>,
    return
  }
  func.func @transform_0(%arg0: i32) -> (i32, i32, i32) {
    %c0_i32 = arith.constant 0 : i32
    %c0_i32_0 = arith.constant 0 : i32
    %c0_i32_1 = arith.constant 0 : i32
    return %arg0, %c0_i32, %c0_i32_0 : i32, i32, i32
  }
  func.func @transform_1(%arg0: i32) -> (i32, i32, i32) {
    %c0_i32 = arith.constant 0 : i32
    %c0_i32_0 = arith.constant 0 : i32
    %c0_i32_1 = arith.constant 0 : i32
    %c0_i32_2 = arith.constant 0 : i32
    return %c0_i32, %c0_i32_0, %c0_i32_1 : i32, i32, i32
  }
  func.func @transform_2(%arg0: i32) -> (i32, i32) {
    %c0_i32 = arith.constant 0 : i32
    %c0_i32_0 = arith.constant 0 : i32
    %c0_i32_1 = arith.constant 0 : i32
    return %c0_i32, %c0_i32_0 : i32, i32
  }
  func.func @transform_3(%arg0: i32) -> (i32, i32, i32) {
    %c0_i32 = arith.constant 0 : i32
    %c0_i32_0 = arith.constant 0 : i32
    %c0_i32_1 = arith.constant 0 : i32
    return %arg0, %c0_i32, %c0_i32_0 : i32, i32, i32
  }
}

</mosaic_0001>

<bundles_post_ra>
// kernel: tpu_custom_call.1
= control target key start
LH: loop header
LB: loop body
LE: loop exit
PB: predicated region body
PF: predicated region fallthrough
CT: control target
= control target key end

     0   :  { %8 = vsyncpa [#allocation3], 0  ;;  %s10286_s0 = inlined_call_operand.vmem [shape: f32[2,4,326], index: 0, kind: input, shape index: {}]   ;;  %s10287_s1 = inlined_call_operand.vmem [shape: f32[9,8,4], index: 1, kind: input, shape index: {}]   ;;  %s10288_s2 = inlined_call_operand.vmem [shape: f32[8,1], index: 2, kind: input, shape index: {}]   ;;  %s10289_s3 = inlined_call_operand.hbm [shape: f32[2,8,288], index: 3, kind: output, shape index: {}]  }
   0x1   :  { %10 = vsyncpa [#allocation3 + $0x1], 0  ;;  %s9304_s12 = smov 0   ;;  %s9306_s13 = smov 0  }
   0x2   :  { %s9308_s14 = smov 0   ;;  %s9310_s15 = smov 0  }
   0x3 LB: > { %s9325_s16 = sadd.s32 4294967295, %s9270_s15   ;;  %s8653_s17 = sadd.s32 4294967294, %s9270_s15   ;;  %s9270_s15 = sphi %s9310_s15, %s10295_s15   ;;  %s9266_s14 = sphi %s9308_s14, %s10294_s14   ;;  %s9262_s13 = sphi %s9306_s13, %s10293_s13   ;;  %s9258_s12 = sphi %s9304_s12, %s10292_s12  }
   0x4   : > { %s9329_s18 = sadd.s32 1, %s9270_s15   ;;  %s91_s19 = sadd.s32 1, %s9266_s14 }
   0x5   : > { %s88_s20 = ssub.s32 %s9270_s15, %s9329_s18  ;;  %p101_p0 = scmp.ne.s32.totalorder %s9266_s14, %s9262_s13 }
   0x6   : > { %p89_p1 = scmp.eq.s32.totalorder %s88_s20, 0  ;;  %p102_p2 = scmp.eq.s32.totalorder %s9325_s16, 1 }
   0x7   : > { %p107_p3 = scmp.ne.s32.totalorder %s9262_s13, %s9258_s12  ;;  %p108_p4 = scmp.eq.s32.totalorder %s8653_s17, 1 }
   0x8   : > { %s9340_s21 = scalar_select %p89_p1, %s9266_s14, %s91_s19  }
   0x9   : > { %p9342_p5 = por %p102_p2, %p101_p0  ;;  %p9346_p6 = por %p108_p4, %p107_p3 }
   0xa   : > { %p8656_p7 = scmp.ge.s32.totalorder %s9270_s15, 1  ;;  %p140_p8 = scmp.lt.s32.totalorder %s9270_s15, 3 }
   0xc   : > { %p141_p9 = pnand %p8656_p7, %p140_p8 }
   0xd   : > { %p164_p10 = scmp.lt.s32.totalorder (!%p141_p9), %s9325_s16, 1  ;;  %v9272_v0 = vmov (!%p141_p9), 0.0   ;;  %s9273_s29 = smov (!%p141_p9), 127   ;;  %vm9274_vm0 = vmmov (!%p141_p9), 0   ;;  %v8658_v4 = vld [vmem:[%s10287_s1 + $0x8] sm:$0xff] (!%p141_p9)  ;;  %vm186_vm1 = vcmask (!%p141_p9), 31744  }
   0xe   : > { %144 = sbr.rel (%p141_p9) target bundleno = 807 (0x327), region = 32  ;;  %8777 = vmatprep.subr.mxu1 (!%p141_p9), %v9272_v0  ;;  %263 = vmatprep.mubr.f32.mxu0 (!%p141_p9), %v9272_v0  ;;  %s9275_s30 = smov (!%p141_p9), 126   ;;  %v188_v5 = vsel (!%p141_p9), %vm186_vm1, %v8658_v4, 0  ;;  %vm183_vm2 = vcmask (!%p141_p9), 1039360   ;;  %vm190_vm3 = vcmask (!%p141_p9), 1043456   ;;  %v171_v37 = vld [vmem:[%s10287_s1] sm:$0xff] (!%p141_p9) }
   0xf   : > { %8779 = vmatprep.mubr.msk.f32.mxu1 (!%p141_p9), %vm9274_vm0, %v9272_v0  ;;  %s9276_s4 = smov (!%p141_p9), 110   ;;  %s9277_s5 = smov (!%p141_p9), 109   ;;  %v9397_v6 = vand.u32 (!%p141_p9), 4294901760, %v188_v5  ;;  %v1109_v42 = vsel (!%p141_p9), %vm186_vm1, %v171_v37, 0  ;;  %vm3904_vm4 = vcmask (!%p141_p9), 891904   ;;  %v8659_v60 = vld [vmem:[%s10287_s1 + $0x10] sm:$0xff] (!%p141_p9) }
  0x10   : > { %s9278_s6 = smov (!%p141_p9), 108   ;;  %s9279_s7 = smov (!%p141_p9), 92   ;;  %v9457_v45 = vand.u32 (!%p141_p9), 4294901760, %v1109_v42  ;;  %v2040_v63 = vsel (!%p141_p9), %vm186_vm1, %v8659_v60, 0  ;;  %vm4838_vm5 = vcmask (!%p141_p9), 883712   ;;  %vm5772_vm6 = vcmask (!%p141_p9), 752640  }
  0x11   : > { %s9280_s8 = smov (!%p141_p9), 91   ;;  %s9281_s9 = smov (!%p141_p9), 90   ;;  %v9400_v7 = vsub.f32 (!%p141_p9), %v188_v5, %v9397_v6  ;;  %v9534_v5 = vand.u32 (!%p141_p9), 4294901760, %v2040_v63  ;;  %vm2036_vm7 = vcmask (!%p141_p9), 1031168   ;;  %vm6706_vm8 = vcmask (!%p141_p9), 744448  }
  0x12   : > { %v9479_v51 = vsub.f32 (!%p141_p9), %v1109_v42, %v9457_v45  ;;  %vm2970_vm9 = vcmask (!%p141_p9), 900096   ;;  %vm7640_vm10 = vcmask (!%p141_p9), 736256   ;;  %s161_s17 = sand.u32 (!%p141_p9), 1, %s9262_s13   ;;  %vm8577_vm11 = vcmask (!%p141_p9), 261120  }
  0x13   : > { %v9403_v9 = vand.u32 (!%p141_p9), 4294901760, %v9400_v7  ;;  %s9153_s19 = smul.u32 (!%p141_p9), 24, %s161_s17 }
  0x14   : > { %v9488_v53 = vand.u32 (!%p141_p9), 4294901760, %v9479_v51 }
  0x15   : > { %s165_s24 = scalar_select %p164_p10, %s9325_s16, 1  ;;  %v267_v14 = vsub.f32 %v9400_v7, %v9403_v9 }
  0x16   : > { %v1187_v56 = vsub.f32 %v9479_v51, %v9488_v53  ;;  %s163_s20 = scalar_lea.vmem [#allocation2], %s9153_s19 }
  0x17   : > { %s9154_s25 = smul.u32 12, %s165_s24  ;;  %v268_v23 = vand.u32 4294901760, %v267_v14 }
  0x18   : > { %v1188_v59 = vand.u32 4294901760, %v1187_v56  ;;  %s9155_s24 = smul.u32 384, %s9325_s16  ;;  %s9283_s16 = smov [#allocation2]  }
  0x19   : > { %s168_s28 = scalar_lea.vmem %s10286_s0, %s9154_s25  ;;  %s8594_s25 = sshll.u32 %s163_s20, 4  ;;  %s10246_s25 = int_to_ptr.vmem [resolvable:$true] %s8594_s25 }
  0x1a   : > { %v9359_v1 = vld [vmem:[%s168_s28] sm:$0xff]  ;;  %v9369_v3 = vld [vmem:[%s168_s28 + $0x8] sm:$0xf]  ;;  %s10244_s28 = scalar_lea.hbm %s10289_s3, %s9155_s24 }
  0x1b   : > { %177 = vrot.lane.b32.xlu1 %v9359_v1, %s9273_s29  ;;  %v9364_v2 = vcombine.high %v9359_v1, %v9359_v1  ;;  %v1115_v40 = vsel %vm190_vm3, %v9369_v3, 0  ;;  %v1111_v61 = vsel %vm190_vm3, %v9359_v1, 0 }
  0x1c   : > { %v9453_v44 = vand.u32 4294901760, %v1115_v40 }
  0x1d   : > { %179 = vrot.lane.b32.xlu0 %v9364_v2, %s9273_s29  ;;  %v1113_v54 = vsel %vm190_vm3, %v9364_v2, 0 }
  0x1e   : > { %v9474_v50 = vsub.f32 %v1115_v40, %v9453_v44  ;;  %v9504_v57 = vand.u32 4294901760, %v1113_v54 }
  0x1f   : > { %2032 = vrot.lane.b32.xlu1 %v9364_v2, %s9275_s30 }
  0x20   : > { %v1661_v52 = vand.u32 4294901760, %v9474_v50  ;;  %v9521_v62 = vsub.f32 %v1113_v54, %v9504_v57 }
  0x21   : > { %181 = vrot.lane.b32.xlu0 %v9369_v3, %s9273_s29  ;;  %s8580_s29 = scalar_lea.sflag [#allocation3], %s161_s17 }
  0x22   : > { %v1662_v55 = vsub.f32 %v9474_v50, %v1661_v52 }
  0x23   : > { %2030 = vrot.lane.b32.xlu1 %v9359_v1, %s9275_s30 }
  0x24   : > { %v1663_v58 = vand.u32 4294901760, %v1662_v55 }
  0x25   : > { %2034 = vrot.lane.b32.xlu0 %v9369_v3, %s9275_s30  ;;  %s9208_s30 = scalar_lea.vmem %s10246_s25, 384 }
  0x26   : > { %p9209_p11 = scmp.ne.s32.totalorder %s10246_s25, %s9208_s30 }
  0x27   : > { %2968 = vrot.lane.b32.xlu1 %v9369_v3, %s9276_s4 }
  0x28   : > { %p9210_p12 = pnand %p9209_p11, %p9342_p5 }
  0x29   : > { %2966 = vrot.lane.b32.xlu0 %v9364_v2, %s9276_s4 }
  0x2a   : > { %p9211_p13 = pneg %p9210_p12 }
  0x2b   : > { %3900 = vrot.lane.b32.xlu1 %v9364_v2, %s9277_s5 }
  0x2d   : > { %2964 = vrot.lane.b32.xlu0 %v9359_v1, %s9276_s4  ;;  %s9212_s4 = sshll.u32 %s9283_s16, 4  ;;  %s9213_s4 = int_to_ptr.vmem [resolvable:$false] %s9212_s4 }
  0x2e   : > { %p9215_p0 = scmp.lt.s32.totalorder %s10246_s25, %s9213_s4 }
  0x2f   : > { %3898 = vrot.lane.b32.xlu1 %v9359_v1, %s9277_s5 }
  0x31   : > { %3902 = vrot.lane.b32.xlu0 %v9369_v3, %s9277_s5  ;;  %s9214_s5 = scalar_lea.vmem %s9213_s4, 768 }
  0x32   : > { %p9216_p1 = scmp.lt.s32.totalorder %s9214_s5, %s9208_s30 }
  0x33   : > { %4836 = vrot.lane.b32.xlu1 %v9369_v3, %s9278_s6 }
  0x34   : > { %p9217_p2 = por %p9216_p1, %p9215_p0 }
  0x35   : > { %4834 = vrot.lane.b32.xlu0 %v9364_v2, %s9278_s6 }
  0x36   : > { %p9218_p3 = pnand %p9217_p2, %p9211_p13 }
  0x37   : > { %5768 = vrot.lane.b32.xlu1 %v9364_v2, %s9279_s7 }
  0x39   : > { %4832 = vrot.lane.b32.xlu0 %v9359_v1, %s9278_s6 }
  0x3b   : > { %5766 = vrot.lane.b32.xlu1 %v9359_v1, %s9279_s7 }
  0x3d   : > { %5770 = vrot.lane.b32.xlu0 %v9369_v3, %s9279_s7 }
  0x3f   : > { %6704 = vrot.lane.b32.xlu1 %v9369_v3, %s9280_s8 }
  0x41   : > { %6702 = vrot.lane.b32.xlu0 %v9364_v2, %s9280_s8 }
  0x43   : > { %7636 = vrot.lane.b32.xlu1 %v9364_v2, %s9281_s9  ;;  %v9527_v2 = vand.u32 4294901760, %v1111_v61 }
  0x45   : > { %6700 = vrot.lane.b32.xlu0 %v9359_v1, %s9280_s8 }
  0x47   : > { %7634 = vrot.lane.b32.xlu1 %v9359_v1, %s9281_s9 }
  0x49   : > { %7638 = vrot.lane.b32.xlu0 %v9369_v3, %s9281_s9  ;;  %v1197_v3 = vand.u32 4294901760, %v9521_v62 }
  0x8d   : > { %v178_v8 = vpop.permute.xlu1 %177 }
  0x8f   : > { %v180_v10 = vpop.permute.xlu0 %179 }
  0x90   : > { %v184_v11 = vsel %vm183_vm2, %v178_v8, %v180_v10  ;;  %v9543_v8 = vsub.f32 %v1111_v61, %v9527_v2 }
  0x91   : > { %v191_v12 = vsel %vm190_vm3, %v184_v11, 0  ;;  %v9410_v15 = vpop.permute.xlu1 %2032 }
  0x92   : > { %v9406_v13 = vand.u32 4294901760, %v191_v12 }
  0x93   : > { %v182_v16 = vpop.permute.xlu0 %181 }
  0x94   : > { %v9413_v17 = vsub.f32 %v191_v12, %v9406_v13  ;;  %v185_v18 = vsel %vm183_vm2, %v180_v10, %v182_v16  ;;  %v195_v19 = vsel %vm190_vm3, %v182_v16, 0  ;;  %v9556_v12 = vsub.f32 %v2040_v63, %v9534_v5 }
  0x95   : > { %v193_v20 = vsel %vm190_vm3, %v185_v18, 0  ;;  %v9417_v21 = vand.u32 4294901760, %v195_v19  ;;  %v9428_v28 = vpop.permute.xlu1 %2030 }
  0x96   : > { %v9419_v22 = vand.u32 4294901760, %v193_v20  ;;  %v283_v24 = vand.u32 4294901760, %v9413_v17  ;;  %v2037_v54 = vsel %vm2036_vm7, %v9428_v28, %v9410_v15 }
  0x97   : > { %v740_v25 = vsub.f32 %v195_v19, %v9417_v21  ;;  %8778 = vmatpush3.msra.mxu1 %v9417_v21  ;;  %v9424_v26 = vpop.permute.xlu0 %2034  ;;  %v9573_v19 = vand.u32 4294901760, %v9556_v12  ;;  %v2042_v28 = vsel %vm190_vm3, %v2037_v54, 0 }
  0x98   : > { %v276_v27 = vsub.f32 %v193_v20, %v9419_v22  ;;  %198 = vmatprep.subr.mxu0 %v9419_v22  ;;  %8780 = vmatmul.mubr.f32.vlgmr.msra.gmra.mrb[0].mxu1 %v268_v23  ;;  %v284_v32 = vsub.f32 %v9413_v17, %v283_v24  ;;  %v2046_v1 = vsel %vm190_vm3, %v9424_v26, 0 }
  0x99   : > { %v741_v29 = vand.u32 4294901760, %v740_v25  ;;  %200 = vmatpush1.msra.mxu0 %v9406_v13  ;;  %8782 = vmatprep.subr.mxu1 %v9272_v0  ;;  %v9440_v35 = vpop.permute.xlu1 %2968 }
  0x9a   : > { %269 = vmatmul.mubr.f32.vlgmr.msra.gmra.mrb[0].mxu0 %v268_v23  ;;  %8784 = vmatprep.mubr.msk.f32.mxu1 %vm9274_vm0, %v9272_v0  ;;  %v277_v30 = vand.u32 4294901760, %v276_v27  ;;  %v285_v39 = vand.u32 4294901760, %v284_v32 }
  0x9b   : > { %v742_v31 = vsub.f32 %v740_v25, %v741_v29  ;;  %349 = vmatprep.mubr.f32.mxu0 %v9272_v0  ;;  %v9438_v33 = vpop.permute.xlu0 %2966 }
  0x9c   : > { %v278_v34 = vsub.f32 %v276_v27, %v277_v30 }
  0x9d   : > { %v743_v36 = vand.u32 4294901760, %v742_v31  ;;  %v3901_v43 = vpop.permute.xlu1 %3900 }
  0x9e   : > { %v279_v38 = vand.u32 4294901760, %v278_v34 }
  0x9f   : > { %8783 = vmatpush3.msra.mxu1 %v743_v36  ;;  %v9447_v41 = vpop.permute.xlu0 %2964 }
  0xa0   : > { %280 = vmatprep.subr.mxu0 %v279_v38  ;;  %8785 = vmatmul.mubr.f32.vlgmr.msra.gmra.mrb[2].mxu1 %v9397_v6 }
  0xa1   : > { %8787 = vmatprep.subr.mxu1 %v9272_v0  ;;  %286 = vmatpush1.msra.mxu0 %v285_v39  ;;  %v3899_v48 = vpop.permute.xlu1 %3898 }
  0xa2   : > { %8788 = vmatpush3.msra.mxu1 %v740_v25  ;;  %351 = vmatmul.mubr.f32.vlgmr.msra.gmra.mrb[0].mxu0 %v9397_v6  ;;  %v9468_v49 = vsel %vm3904_vm4, %v3899_v48, %v3901_v43 }
  0xa3   : > { %359 = vmatprep.subr.mxu0 %v276_v27  ;;  %8789 = vmatprep.mubr.msk.f32.mxu1 %vm9274_vm0, %v9272_v0  ;;  %v9459_v46 = vpop.permute.xlu0 %3902  ;;  %v8660_v27 = vld [vmem:[%s10287_s1 + $0x18] sm:$0xff] }
  0xa4   : > { %362 = vmatpush1.msra.mxu0 %v9413_v17  ;;  %8792 = vmatprep.subr.mxu1 %v9272_v0  ;;  %v9464_v47 = vsel %vm3904_vm4, %v3901_v43, %v9459_v46  ;;  %v1203_v17 = vand.u32 4294901760, %v9543_v8 }
  0xa5   : > { %435 = vmatprep.subr.mxu0 %v9419_v22  ;;  %8790 = vmatmul.mubr.f32.vlgmr.msra.gmra.mrb[4].mxu1 %v9400_v7  ;;  %v9551_v10 = vpop.permute.xlu1 %4836 }
  0xa6   : > { %8793 = vmatpush3.msra.mxu1 %v9417_v21  ;;  %8794 = vmatprep.mubr.msk.f32.mxu1 %vm9274_vm0, %v9272_v0 }
  0xa7   : > { %8797 = vmatprep.subr.mxu1 %v9272_v0  ;;  %425 = vmatprep.mubr.f32.mxu0 %v9272_v0  ;;  %v4835_v4 = vpop.permute.xlu0 %4834 }
  0xa9   : > { %8795 = vmatmul.mubr.f32.vlgmr.msra.gmra.mrb[6].mxu1 %v9403_v9  ;;  %v5769_v31 = vpop.permute.xlu1 %5768 }
  0xaa   : > { %8798 = vmatpush3.msra.mxu1 %v741_v29  ;;  %428 = vmatmul.mubr.f32.vlgmr.msra.gmra.mrb[0].mxu0 %v9400_v7  ;;  %v9538_v7 = vand.u32 4294901760, %v2046_v1  ;;  %v2974_v29 = vsel %vm186_vm1, %v8660_v27, 0 }
  0xab   : > { %437 = vmatpush1.msra.mxu0 %v9406_v13  ;;  %8799 = vmatprep.mubr.msk.f32.mxu1 %vm9274_vm0, %v9272_v0  ;;  %v4833_v11 = vpop.permute.xlu0 %4832  ;;  %v9615_v32 = vand.u32 4294901760, %v2974_v29 }
  0xac   : > { %513 = vmatprep.subr.mxu0 %v277_v30  ;;  %8802 = vmatprep.subr.mxu1 %v9272_v0  ;;  %v9561_v14 = vsel %vm4838_vm5, %v4833_v11, %v4835_v4  ;;  %v9567_v16 = vsub.f32 %v2046_v1, %v9538_v7  ;;  %v2980_v30 = vsel %vm190_vm3, %v9440_v35, 0 }
  0xad   : > { %8800 = vmatmul.mubr.f32.vlgmr.msra.gmra.mrb[8].mxu1 %v9397_v6  ;;  %500 = vmatprep.mubr.f32.mxu0 %v9272_v0  ;;  %v9619_v34 = vand.u32 4294901760, %v2980_v30  ;;  %v5767_v38 = vpop.permute.xlu1 %5766  ;;  %v9634_v39 = vsub.f32 %v2974_v29, %v9615_v32 }
  0xae   : > { %8803 = vmatpush3.msra.mxu1 %v9417_v21  ;;  %8804 = vmatprep.mubr.msk.f32.mxu1 %vm9274_vm0, %v9272_v0  ;;  %v2592_v20 = vand.u32 4294901760, %v9567_v16  ;;  %v1204_v21 = vsub.f32 %v9543_v8, %v1203_v17  ;;  %v9636_v40 = vsel %vm5772_vm6, %v5767_v38, %v5769_v31 }
  0xaf   : > { %8807 = vmatprep.subr.mxu1 %v9272_v0  ;;  %v9621_v36 = vpop.permute.xlu0 %5770  ;;  %v9642_v42 = vsub.f32 %v2980_v30, %v9619_v34  ;;  %v9647_v43 = vand.u32 4294901760, %v9634_v39 }
  0xb0   : > { %v1205_v23 = vand.u32 4294901760, %v1204_v21  ;;  %v9626_v37 = vsel %vm5772_vm6, %v5769_v31, %v9621_v36  ;;  %v2972_v31 = vsel %vm2970_vm9, %v9438_v33, %v9440_v35 }
  0xb1   : > { %8805 = vmatmul.mubr.f32.vlgmr.msra.gmra.mrb[10].mxu1 %v9397_v6  ;;  %v3526_v48 = vand.u32 4294901760, %v9642_v42  ;;  %v2978_v38 = vsel %vm190_vm3, %v2972_v31, 0 }
  0xb2   : > { %504 = vmatmul.mubr.f32.vlgmr.msra.gmra.mrb[0].mxu0 %v9403_v9  ;;  %8808 = vmatpush3.msra.mxu1 %v9453_v44  ;;  %v1198_v9 = vsub.f32 %v9521_v62, %v1197_v3 }
  0xb3   : > { %517 = vmatpush1.msra.mxu0 %v283_v24  ;;  %580 = vmatprep.mubr.f32.mxu0 %v9272_v0  ;;  %v9704_v61 = vpop.permute.xlu0 %6702 }
  0xb4   : > { %589 = vmatprep.subr.mxu0 %v9419_v22  ;;  %8809 = vmatprep.mubr.msk.f32.mxu1 %vm9274_vm0, %v9272_v0  ;;  %v1199_v18 = vand.u32 4294901760, %v1198_v9  ;;  %v2593_v22 = vsub.f32 %v9567_v16, %v2592_v20 }
  0xb5   : > { %8810 = vmatmul.mubr.f32.vlgmr.msra.gmra.mrb[12].mxu1 %v1188_v59  ;;  %8812 = vmatprep.subr.mxu1 %v9272_v0 }
  0xb6   : > { %8813 = vmatpush3.msra.mxu1 %v1663_v58  ;;  %8814 = vmatprep.mubr.msk.f32.mxu1 %vm9274_vm0, %v9272_v0  ;;  %v2594_v25 = vand.u32 4294901760, %v2593_v22  ;;  %v8661_v58 = vld [vmem:[%s10287_s1 + $0x20] sm:$0xff]  ;;  %v8662_v22 = vld [vmem:[%s10287_s1 + $0x28] sm:$0xff] }
  0xb7   : > { %8817 = vmatprep.subr.mxu1 %v9272_v0 }
  0xb9   : > { %8815 = vmatmul.mubr.f32.vlgmr.msra.gmra.mrb[14].mxu1 %v9457_v45 }
  0xba   : > { %582 = vmatmul.mubr.f32.vlgmr.msra.gmra.mrb[0].mxu0 %v9397_v6  ;;  %8818 = vmatpush3.msra.mxu1 %v9474_v50 }
  0xbb   : > { %591 = vmatpush1.msra.mxu0 %v9406_v13  ;;  %654 = vmatprep.mubr.f32.mxu0 %v9272_v0  ;;  %v9559_v13 = vsel %vm4838_vm5, %v4835_v4, %v9551_v10 }
  0xbc   : > { %1118 = vmatprep.subr.mxu0 %v9504_v57  ;;  %8819 = vmatprep.mubr.msk.f32.mxu1 %vm9274_vm0, %v9272_v0 }
  0xbd   : > { %8820 = vmatmul.mubr.f32.vlgmr.msra.gmra.mrb[16].mxu1 %v9479_v51  ;;  %8822 = vmatprep.subr.mxu1 %v9272_v0 }
  0xbe   : > { %8823 = vmatpush3.msra.mxu1 %v9453_v44  ;;  %8824 = vmatprep.mubr.msk.f32.mxu1 %vm9274_vm0, %v9272_v0 }
  0xbf   : > { %8827 = vmatprep.subr.mxu1 %v9272_v0 }
  0xc1   : > { %8825 = vmatmul.mubr.f32.vlgmr.msra.gmra.mrb[18].mxu1 %v9488_v53 }
  0xc2   : > { %656 = vmatmul.mubr.f32.vlgmr.msra.gmra.mrb[0].mxu0 %v9397_v6  ;;  %8828 = vmatpush3.msra.mxu1 %v1661_v52  ;;  %v2118_v6 = vsub.f32 %v9556_v12, %v9573_v19 }
  0xc3   : > { %1120 = vmatpush1.msra.mxu0 %v9527_v2  ;;  %1183 = vmatprep.mubr.f32.mxu0 %v9272_v0 }
  0xc4   : > { %1200 = vmatprep.subr.mxu0 %v1199_v18  ;;  %8829 = vmatprep.mubr.msk.f32.mxu1 %vm9274_vm0, %v9272_v0  ;;  %v9596_v24 = vand.u32 4294901760, %v2118_v6 }
  0xc5   : > { %8830 = vmatmul.mubr.f32.vlgmr.msra.gmra.mrb[20].mxu1 %v9457_v45  ;;  %8832 = vmatprep.subr.mxu1 %v9272_v0 }
  0xc6   : > { %8833 = vmatpush3.msra.mxu1 %v9453_v44  ;;  %8834 = vmatprep.mubr.msk.f32.mxu1 %vm9274_vm0, %v9272_v0  ;;  %v2038_v44 = vsel %vm2036_vm7, %v9410_v15, %v9424_v26  ;;  %v3052_v26 = vsub.f32 %v9634_v39, %v9647_v43 }
  0xc7   : > { %8837 = vmatprep.subr.mxu1 %v9272_v0  ;;  %v2044_v50 = vsel %vm190_vm3, %v2038_v44, 0  ;;  %v2971_v44 = vsel %vm2970_vm9, %v9447_v41, %v9438_v33 }
  0xc8   : > { %v9670_v52 = vand.u32 4294901760, %v2044_v50  ;;  %v9676_v55 = vand.u32 4294901760, %v3052_v26  ;;  %v8663_v26 = vld [vmem:[%s10287_s1 + $0x30] sm:$0xff]  ;;  %v2976_v41 = vsel %vm190_vm3, %v2971_v44, 0 }
  0xc9   : > { %8835 = vmatmul.mubr.f32.vlgmr.msra.gmra.mrb[22].mxu1 %v9457_v45 }
  0xca   : > { %1189 = vmatmul.mubr.f32.vlgmr.msra.gmra.mrb[0].mxu0 %v1188_v59  ;;  %8838 = vmatpush3.msra.mxu1 %v9538_v7  ;;  %v9687_v15 = vsub.f32 %v2044_v50, %v9670_v52  ;;  %v9698_v59 = vand.u32 4294901760, %v2042_v28 }
  0xcb   : > { %1206 = vmatpush1.msra.mxu0 %v1205_v23  ;;  %1269 = vmatprep.mubr.f32.mxu0 %v9272_v0  ;;  %v4842_v23 = vsel %vm186_vm1, %v8662_v22, 0 }
  0xcc   : > { %1279 = vmatprep.subr.mxu0 %v9521_v62  ;;  %8839 = vmatprep.mubr.msk.f32.mxu1 %vm9274_vm0, %v9272_v0  ;;  %v2128_v60 = vand.u32 4294901760, %v9687_v15  ;;  %v9714_v1 = vsub.f32 %v2042_v28, %v9698_v59 }
  0xcd   : > { %8840 = vmatmul.mubr.f32.vlgmr.msra.gmra.mrb[24].mxu1 %v9596_v24  ;;  %8842 = vmatprep.subr.mxu1 %v9272_v0 }
  0xce   : > { %8843 = vmatpush3.msra.mxu1 %v2594_v25  ;;  %8844 = vmatprep.mubr.msk.f32.mxu1 %vm9274_vm0, %v9272_v0  ;;  %v9780_v25 = vand.u32 4294901760, %v4842_v23 }
  0xcf   : > { %8847 = vmatprep.subr.mxu1 %v9272_v0 }
  0xd1   : > { %8845 = vmatmul.mubr.f32.vlgmr.msra.gmra.mrb[26].mxu1 %v9534_v5 }
  0xd2   : > { %1271 = vmatmul.mubr.f32.vlgmr.msra.gmra.mrb[0].mxu0 %v9457_v45  ;;  %8848 = vmatpush3.msra.mxu1 %v9567_v16 }
  0xd3   : > { %1282 = vmatpush1.msra.mxu0 %v9543_v8  ;;  %1345 = vmatprep.mubr.f32.mxu0 %v9272_v0  ;;  %v2134_v8 = vand.u32 4294901760, %v9714_v1 }
  0xd4   : > { %1355 = vmatprep.subr.mxu0 %v9504_v57  ;;  %8849 = vmatprep.mubr.msk.f32.mxu1 %vm9274_vm0, %v9272_v0 }
  0xd5   : > { %8850 = vmatmul.mubr.f32.vlgmr.msra.gmra.mrb[28].mxu1 %v9556_v12  ;;  %8852 = vmatprep.subr.mxu1 %v9272_v0 }
  0xd6   : > { %8853 = vmatpush3.msra.mxu1 %v9538_v7  ;;  %8854 = vmatprep.mubr.msk.f32.mxu1 %vm9274_vm0, %v9272_v0 }
  0xd7   : > { %8857 = vmatprep.subr.mxu1 %v9272_v0 }
  0xd9   : > { %8855 = vmatmul.mubr.f32.vlgmr.msra.gmra.mrb[30].mxu1 %v9573_v19 }
  0xda   : > { %1348 = vmatmul.mubr.f32.vlgmr.msra.gmra.mrb[0].mxu0 %v9479_v51  ;;  %8858 = vmatpush3.msra.mxu1 %v2592_v20  ;;  %v3527_v51 = vsub.f32 %v9642_v42, %v3526_v48 }
  0xdb   : > { %1357 = vmatpush1.msra.mxu0 %v9527_v2  ;;  %1420 = vmatprep.mubr.f32.mxu0 %v9272_v0 }
  0xdc   : > { %1433 = vmatprep.subr.mxu0 %v1197_v3  ;;  %8859 = vmatprep.mubr.msk.f32.mxu1 %vm9274_vm0, %v9272_v0  ;;  %v3528_v56 = vand.u32 4294901760, %v3527_v51  ;;  %v6701_v3 = vpop.permute.xlu0 %6700  ;;  %v9855_v51 = vand.u32 4294901760, %v2976_v41 }
  0xdd   : > { %8862 = vmatprep.subr.mxu1 %v9272_v0  ;;  %8860 = vmatmul.mubr.f32.vlgmr.msra.gmra.mrb[32].mxu1 %v9534_v5 }
  0xde   : > { %8863 = vmatpush3.msra.mxu1 %v9538_v7  ;;  %8864 = vmatprep.mubr.msk.f32.mxu1 %vm9274_vm0, %v9272_v0 }
  0xdf   : > { %8867 = vmatprep.subr.mxu1 %v9272_v0 }
  0xe1   : > { %8865 = vmatmul.mubr.f32.vlgmr.msra.gmra.mrb[34].mxu1 %v9534_v5 }
  0xe2   : > { %1424 = vmatmul.mubr.f32.vlgmr.msra.gmra.mrb[0].mxu0 %v9488_v53  ;;  %8868 = vmatpush3.msra.mxu1 %v9619_v34  ;;  %v3908_v53 = vsel %vm186_vm1, %v8661_v58, 0 }
  0xe3   : > { %1437 = vmatpush1.msra.mxu0 %v1203_v17  ;;  %1500 = vmatprep.mubr.f32.mxu0 %v9272_v0  ;;  %v9707_v62 = vand.u32 4294901760, %v3908_v53  ;;  %v2135_v17 = vsub.f32 %v9714_v1, %v2134_v8 }
  0xe4   : > { %1509 = vmatprep.subr.mxu0 %v9504_v57  ;;  %8869 = vmatprep.mubr.msk.f32.mxu1 %vm9274_vm0, %v9272_v0  ;;  %v3914_v57 = vsel %vm190_vm3, %v9459_v46, 0  ;;  %v2129_v46 = vsub.f32 %v9687_v15, %v2128_v60 }
  0xe5   : > { %8870 = vmatmul.mubr.f32.vlgmr.msra.gmra.mrb[36].mxu1 %v9676_v55  ;;  %8872 = vmatprep.subr.mxu1 %v9272_v0  ;;  %v9711_v63 = vand.u32 4294901760, %v3914_v57  ;;  %v9727_v4 = vsub.f32 %v3908_v53, %v9707_v62  ;;  %v2136_v20 = vand.u32 4294901760, %v2135_v17 }
  0xe6   : > { %8873 = vmatpush3.msra.mxu1 %v3528_v56  ;;  %8874 = vmatprep.mubr.msk.f32.mxu1 %vm9274_vm0, %v9272_v0  ;;  %v2130_v9 = vand.u32 4294901760, %v2129_v46 }
  0xe7   : > { %8877 = vmatprep.subr.mxu1 %v9272_v0  ;;  %v4459_v7 = vsub.f32 %v3914_v57, %v9711_v63  ;;  %v9741_v11 = vand.u32 4294901760, %v9727_v4 }
  0xe9   : > { %8875 = vmatmul.mubr.f32.vlgmr.msra.gmra.mrb[38].mxu1 %v9615_v32  ;;  %v4460_v16 = vand.u32 4294901760, %v4459_v7 }
  0xea   : > { %1502 = vmatmul.mubr.f32.vlgmr.msra.gmra.mrb[0].mxu0 %v9457_v45  ;;  %8878 = vmatpush3.msra.mxu1 %v9642_v42  ;;  %v9827_v42 = vand.u32 4294901760, %v2978_v38 }
  0xeb   : > { %1511 = vmatpush1.msra.mxu0 %v9527_v2  ;;  %1574 = vmatprep.mubr.f32.mxu0 %v9272_v0  ;;  %v9731_v2 = vsel %vm6706_vm8, %v6701_v3, %v9704_v61  ;;  %v4461_v18 = vsub.f32 %v4459_v7, %v4460_v16 }
  0xec   : > { %2049 = vmatprep.subr.mxu0 %v9670_v52  ;;  %8879 = vmatprep.mubr.msk.f32.mxu1 %vm9274_vm0, %v9272_v0  ;;  %v9844_v33 = vsub.f32 %v2978_v38, %v9827_v42 }
  0xed   : > { %8880 = vmatmul.mubr.f32.vlgmr.msra.gmra.mrb[40].mxu1 %v9634_v39  ;;  %8882 = vmatprep.subr.mxu1 %v9272_v0  ;;  %v4462_v6 = vand.u32 4294901760, %v4461_v18 }
  0xee   : > { %8883 = vmatpush3.msra.mxu1 %v9619_v34  ;;  %8884 = vmatprep.mubr.msk.f32.mxu1 %vm9274_vm0, %v9272_v0  ;;  %v3062_v54 = vand.u32 4294901760, %v9844_v33 }
  0xef   : > { %8887 = vmatprep.subr.mxu1 %v9272_v0 }
  0xf1   : > { %8885 = vmatmul.mubr.f32.vlgmr.msra.gmra.mrb[42].mxu1 %v9647_v43 }
  0xf2   : > { %1576 = vmatmul.mubr.f32.vlgmr.msra.gmra.mrb[0].mxu0 %v9457_v45  ;;  %8888 = vmatpush3.msra.mxu1 %v3526_v48  ;;  %v3986_v45 = vsub.f32 %v9727_v4, %v9741_v11 }
  0xf3   : > { %2051 = vmatpush1.msra.mxu0 %v9698_v59  ;;  %2114 = vmatprep.mubr.f32.mxu0 %v9272_v0 }
  0xf4   : > { %2131 = vmatprep.subr.mxu0 %v2130_v9  ;;  %8889 = vmatprep.mubr.msk.f32.mxu1 %vm9274_vm0, %v9272_v0  ;;  %v9760_v21 = vand.u32 4294901760, %v3986_v45  ;;  %v8664_v9 = vld [vmem:[%s10287_s1 + $0x38] sm:$0xff] }
  0xf5   : > { %8890 = vmatmul.mubr.f32.vlgmr.msra.gmra.mrb[44].mxu1 %v9615_v32  ;;  %8892 = vmatprep.subr.mxu1 %v9272_v0 }
  0xf6   : > { %8893 = vmatpush3.msra.mxu1 %v9619_v34  ;;  %8894 = vmatprep.mubr.msk.f32.mxu1 %vm9274_vm0, %v9272_v0 }
  0xf7   : > { %8897 = vmatprep.subr.mxu1 %v9272_v0 }
  0xf9   : > { %8895 = vmatmul.mubr.f32.vlgmr.msra.gmra.mrb[46].mxu1 %v9615_v32 }
  0xfa   : > { %2120 = vmatmul.mubr.f32.vlgmr.msra.gmra.mrb[0].mxu0 %v9596_v24  ;;  %8898 = vmatpush3.msra.mxu1 %v9711_v63  ;;  %v4848_v24 = vsel %vm190_vm3, %v9551_v10, 0  ;;  %v9793_v10 = vsub.f32 %v4842_v23, %v9780_v25 }
  0xfb   : > { %2137 = vmatpush1.msra.mxu0 %v2136_v20  ;;  %2200 = vmatprep.mubr.f32.mxu0 %v9272_v0  ;;  %v9783_v27 = vand.u32 4294901760, %v4848_v24 }
  0xfc   : > { %2210 = vmatprep.subr.mxu0 %v9687_v15  ;;  %8899 = vmatprep.mubr.msk.f32.mxu1 %vm9274_vm0, %v9272_v0  ;;  %v9804_v30 = vand.u32 4294901760, %v9793_v10  ;;  %v9869_v15 = vsub.f32 %v2976_v41, %v9855_v51 }
  0xfd   : > { %8900 = vmatmul.mubr.f32.vlgmr.msra.gmra.mrb[48].mxu1 %v9760_v21  ;;  %8902 = vmatprep.subr.mxu1 %v9272_v0  ;;  %v9799_v29 = vsub.f32 %v4848_v24, %v9783_v27  ;;  %v3912_v24 = vsel %vm190_vm3, %v9464_v47, 0 }
  0xfe   : > { %8903 = vmatpush3.msra.mxu1 %v4462_v6  ;;  %8904 = vmatprep.mubr.msk.f32.mxu1 %vm9274_vm0, %v9272_v0  ;;  %v4920_v35 = vsub.f32 %v9793_v10, %v9804_v30 }
  0xff   : > { %8907 = vmatprep.subr.mxu1 %v9272_v0  ;;  %v5394_v34 = vand.u32 4294901760, %v9799_v29 }
 0x100   : > { %v9833_v48 = vand.u32 4294901760, %v4920_v35  ;;  %v3910_v35 = vsel %vm190_vm3, %v9468_v49, 0 }
 0x101   : > { %8905 = vmatmul.mubr.f32.vlgmr.msra.gmra.mrb[50].mxu1 %v9707_v62  ;;  %v10006_v44 = vand.u32 4294901760, %v3910_v35 }
 0x102   : > { %2202 = vmatmul.mubr.f32.vlgmr.msra.gmra.mrb[0].mxu0 %v9534_v5  ;;  %8908 = vmatpush3.msra.mxu1 %v4459_v7 }
 0x103   : > { %2213 = vmatpush1.msra.mxu0 %v9714_v1  ;;  %2276 = vmatprep.mubr.f32.mxu0 %v9272_v0 }
 0x104   : > { %2286 = vmatprep.subr.mxu0 %v9670_v52  ;;  %8909 = vmatprep.mubr.msk.f32.mxu1 %vm9274_vm0, %v9272_v0 }
 0x105   : > { %8910 = vmatmul.mubr.f32.vlgmr.msra.gmra.mrb[52].mxu1 %v9727_v4  ;;  %8912 = vmatprep.subr.mxu1 %v9272_v0 }
 0x106   : > { %8913 = vmatpush3.msra.mxu1 %v9711_v63  ;;  %8914 = vmatprep.mubr.msk.f32.mxu1 %vm9274_vm0, %v9272_v0 }
 0x107   : > { %8917 = vmatprep.subr.mxu1 %v9272_v0 }
 0x109   : > { %8915 = vmatmul.mubr.f32.vlgmr.msra.gmra.mrb[54].mxu1 %v9741_v11 }
 0x10a   : > { %2279 = vmatmul.mubr.f32.vlgmr.msra.gmra.mrb[0].mxu0 %v9556_v12  ;;  %8918 = vmatpush3.msra.mxu1 %v4460_v16  ;;  %v5395_v12 = vsub.f32 %v9799_v29, %v5394_v34  ;;  %v9922_v16 = vpop.permute.xlu1 %6704 }
 0x10b   : > { %2288 = vmatpush1.msra.mxu0 %v9698_v59  ;;  %2351 = vmatprep.mubr.f32.mxu0 %v9272_v0  ;;  %v6716_v17 = vsel %vm190_vm3, %v9922_v16, 0 }
 0x10c   : > { %2364 = vmatprep.subr.mxu0 %v2128_v60  ;;  %8919 = vmatprep.mubr.msk.f32.mxu1 %vm9274_vm0, %v9272_v0  ;;  %v5396_v50 = vand.u32 4294901760, %v5395_v12  ;;  %v9936_v18 = vand.u32 4294901760, %v6716_v17 }
 0x10d   : > { %8920 = vmatmul.mubr.f32.vlgmr.msra.gmra.mrb[56].mxu1 %v9707_v62  ;;  %8922 = vmatprep.subr.mxu1 %v9272_v0 }
 0x10e   : > { %8923 = vmatpush3.msra.mxu1 %v9711_v63  ;;  %8924 = vmatprep.mubr.msk.f32.mxu1 %vm9274_vm0, %v9272_v0  ;;  %v9952_v6 = vsub.f32 %v6716_v17, %v9936_v18 }
 0x10f   : > { %8927 = vmatprep.subr.mxu1 %v9272_v0 }
 0x110   : > { %v7262_v23 = vand.u32 4294901760, %v9952_v6 }
 0x111   : > { %8925 = vmatmul.mubr.f32.vlgmr.msra.gmra.mrb[58].mxu1 %v9707_v62 }
 0x112   : > { %2355 = vmatmul.mubr.f32.vlgmr.msra.gmra.mrb[0].mxu0 %v9573_v19  ;;  %8928 = vmatpush3.msra.mxu1 %v9783_v27  ;;  %v5776_v19 = vsel %vm186_vm1, %v8663_v26, 0 }
 0x113   : > { %2368 = vmatpush1.msra.mxu0 %v2134_v8  ;;  %2431 = vmatprep.mubr.f32.mxu0 %v9272_v0  ;;  %v9862_v56 = vand.u32 4294901760, %v5776_v19 }
 0x114   : > { %2440 = vmatprep.subr.mxu0 %v9670_v52  ;;  %8929 = vmatprep.mubr.msk.f32.mxu1 %vm9274_vm0, %v9272_v0  ;;  %v5782_v52 = vsel %vm190_vm3, %v9621_v36, 0  ;;  %v3063_v36 = vsub.f32 %v9844_v33, %v3062_v54 }
 0x115   : > { %8930 = vmatmul.mubr.f32.vlgmr.msra.gmra.mrb[60].mxu1 %v9833_v48  ;;  %8932 = vmatprep.subr.mxu1 %v9272_v0  ;;  %v9866_v58 = vand.u32 4294901760, %v5782_v52  ;;  %v9882_v28 = vsub.f32 %v5776_v19, %v9862_v56 }
 0x116   : > { %8933 = vmatpush3.msra.mxu1 %v5396_v50  ;;  %8934 = vmatprep.mubr.msk.f32.mxu1 %vm9274_vm0, %v9272_v0  ;;  %v3064_v57 = vand.u32 4294901760, %v3063_v36 }
 0x117   : > { %8937 = vmatprep.subr.mxu1 %v9272_v0  ;;  %v6327_v53 = vsub.f32 %v5782_v52, %v9866_v58  ;;  %v9892_v60 = vand.u32 4294901760, %v9882_v28 }
 0x119   : > { %8935 = vmatmul.mubr.f32.vlgmr.msra.gmra.mrb[62].mxu1 %v9780_v25  ;;  %v6328_v63 = vand.u32 4294901760, %v6327_v53 }
 0x11a   : > { %2433 = vmatmul.mubr.f32.vlgmr.msra.gmra.mrb[0].mxu0 %v9534_v5  ;;  %8938 = vmatpush3.msra.mxu1 %v9799_v29  ;;  %v9978_v29 = vand.u32 4294901760, %v3912_v24 }
 0x11b   : > { %2442 = vmatpush1.msra.mxu0 %v9698_v59  ;;  %2505 = vmatprep.mubr.f32.mxu0 %v9272_v0  ;;  %v3068_v59 = vand.u32 4294901760, %v9869_v15  ;;  %v6329_v46 = vsub.f32 %v6327_v53, %v6328_v63 }
 0x11c   : > { %2983 = vmatprep.subr.mxu0 %v9827_v42  ;;  %8939 = vmatprep.mubr.msk.f32.mxu1 %vm9274_vm0, %v9272_v0  ;;  %v9992_v38 = vsub.f32 %v3912_v24, %v9978_v29 }
 0x11d   : > { %8940 = vmatmul.mubr.f32.vlgmr.msra.gmra.mrb[64].mxu1 %v9793_v10  ;;  %8942 = vmatprep.subr.mxu1 %v9272_v0  ;;  %v3069_v1 = vsub.f32 %v9869_v15, %v3068_v59  ;;  %v6330_v8 = vand.u32 4294901760, %v6329_v46  ;;  %v4844_v46 = vsel %vm190_vm3, %v9561_v14, 0 }
 0x11e   : > { %8943 = vmatpush3.msra.mxu1 %v9783_v27  ;;  %8944 = vmatprep.mubr.msk.f32.mxu1 %vm9274_vm0, %v9272_v0 }
 0x11f   : > { %8947 = vmatprep.subr.mxu1 %v9272_v0  ;;  %v3070_v3 = vand.u32 4294901760, %v3069_v1  ;;  %v9282_v1 = vmov 0  }
 0x120   : > { %9206 = vset.pattern.permute.xlu0 %v9282_v1 }
 0x121   : > { %8945 = vmatmul.mubr.f32.vlgmr.msra.gmra.mrb[66].mxu1 %v9804_v30 }
 0x122   : > { %2507 = vmatmul.mubr.f32.vlgmr.msra.gmra.mrb[0].mxu0 %v9534_v5  ;;  %8948 = vmatpush3.msra.mxu1 %v5394_v34  ;;  %v5854_v5 = vsub.f32 %v9882_v28, %v9892_v60  ;;  %v8665_v34 = vld [vmem:[%s10287_s1 + $0x40] sm:$0xff] }
 0x123   : > { %2985 = vmatpush1.msra.mxu0 %v9855_v51  ;;  %3048 = vmatprep.mubr.f32.mxu0 %v9272_v0  ;;  %v7644_v12 = vsel %vm186_vm1, %v8665_v34, 0 }
 0x124   : > { %3065 = vmatprep.subr.mxu0 %v3064_v57  ;;  %8949 = vmatprep.mubr.msk.f32.mxu1 %vm9274_vm0, %v9272_v0  ;;  %v9911_v7 = vand.u32 4294901760, %v5854_v5  ;;  %v10013_v50 = vand.u32 4294901760, %v7644_v12  ;;  %v4846_v5 = vsel %vm190_vm3, %v9559_v13, 0 }
 0x125   : > { %8950 = vmatmul.mubr.f32.vlgmr.msra.gmra.mrb[68].mxu1 %v9780_v25  ;;  %8952 = vmatprep.subr.mxu1 %v9272_v0 }
 0x126   : > { %8953 = vmatpush3.msra.mxu1 %v9783_v27  ;;  %8954 = vmatprep.mubr.msk.f32.mxu1 %vm9274_vm0, %v9272_v0  ;;  %v7263_v27 = vsub.f32 %v9952_v6, %v7262_v23  ;;  %v10033_v19 = vsub.f32 %v7644_v12, %v10013_v50 }
 0x127   : > { %8957 = vmatprep.subr.mxu1 %v9272_v0 }
 0x128   : > { %v7264_v31 = vand.u32 4294901760, %v7263_v27 }
 0x129   : > { %8955 = vmatmul.mubr.f32.vlgmr.msra.gmra.mrb[70].mxu1 %v9780_v25 }
 0x12a   : > { %3054 = vmatmul.mubr.f32.vlgmr.msra.gmra.mrb[0].mxu0 %v9676_v55  ;;  %8958 = vmatpush3.msra.mxu1 %v9866_v58  ;;  %v6710_v55 = vsel %vm186_vm1, %v8664_v9, 0 }
 0x12b   : > { %3071 = vmatpush1.msra.mxu0 %v3070_v3  ;;  %3134 = vmatprep.mubr.f32.mxu0 %v9272_v0  ;;  %v9933_v45 = vand.u32 4294901760, %v6710_v55 }
 0x12c   : > { %3144 = vmatprep.subr.mxu0 %v9844_v33  ;;  %8959 = vmatprep.mubr.msk.f32.mxu1 %vm9274_vm0, %v9272_v0  ;;  %v10020_v33 = vsub.f32 %v3910_v35, %v10006_v44 }
 0x12d   : > { %8960 = vmatmul.mubr.f32.vlgmr.msra.gmra.mrb[72].mxu1 %v9911_v7  ;;  %8962 = vmatprep.subr.mxu1 %v9272_v0  ;;  %v9946_v20 = vsub.f32 %v6710_v55, %v9933_v45 }
 0x12e   : > { %8963 = vmatpush3.msra.mxu1 %v6330_v8  ;;  %8964 = vmatprep.mubr.msk.f32.mxu1 %vm9274_vm0, %v9272_v0  ;;  %v4002_v52 = vand.u32 4294901760, %v10020_v33  ;;  %v10117_v8 = vand.u32 4294901760, %v4844_v46 }
 0x12f   : > { %8967 = vmatprep.subr.mxu1 %v9272_v0  ;;  %v9957_v22 = vand.u32 4294901760, %v9946_v20 }
 0x130   : > { %v4003_v36 = vsub.f32 %v10020_v33, %v4002_v52 }
 0x131   : > { %8965 = vmatmul.mubr.f32.vlgmr.msra.gmra.mrb[74].mxu1 %v9862_v56 }
 0x132   : > { %3136 = vmatmul.mubr.f32.vlgmr.msra.gmra.mrb[0].mxu0 %v9615_v32  ;;  %8968 = vmatpush3.msra.mxu1 %v6327_v53 }
 0x133   : > { %3147 = vmatpush1.msra.mxu0 %v9869_v15  ;;  %3210 = vmatprep.mubr.f32.mxu0 %v9272_v0 }
 0x134   : > { %3220 = vmatprep.subr.mxu0 %v9827_v42  ;;  %8969 = vmatprep.mubr.msk.f32.mxu1 %vm9274_vm0, %v9272_v0 }
 0x135   : > { %8970 = vmatmul.mubr.f32.vlgmr.msra.gmra.mrb[76].mxu1 %v9882_v28  ;;  %8972 = vmatprep.subr.mxu1 %v9272_v0 }
 0x136   : > { %8973 = vmatpush3.msra.mxu1 %v9866_v58  ;;  %8974 = vmatprep.mubr.msk.f32.mxu1 %vm9274_vm0, %v9272_v0 }
 0x137   : > { %8977 = vmatprep.subr.mxu1 %v9272_v0 }
 0x139   : > { %8975 = vmatmul.mubr.f32.vlgmr.msra.gmra.mrb[78].mxu1 %v9892_v60 }
 0x13a   : > { %3213 = vmatmul.mubr.f32.vlgmr.msra.gmra.mrb[0].mxu0 %v9634_v39  ;;  %8978 = vmatpush3.msra.mxu1 %v6328_v63  ;;  %v6788_v39 = vsub.f32 %v9946_v20, %v9957_v22 }
 0x13b   : > { %3222 = vmatpush1.msra.mxu0 %v9855_v51  ;;  %3285 = vmatprep.mubr.f32.mxu0 %v9272_v0 }
 0x13c   : > { %3298 = vmatprep.subr.mxu0 %v3062_v54  ;;  %8979 = vmatprep.mubr.msk.f32.mxu1 %vm9274_vm0, %v9272_v0  ;;  %v9981_v47 = vand.u32 4294901760, %v6788_v39 }
 0x13d   : > { %8980 = vmatmul.mubr.f32.vlgmr.msra.gmra.mrb[80].mxu1 %v9862_v56  ;;  %8982 = vmatprep.subr.mxu1 %v9272_v0 }
 0x13e   : > { %8983 = vmatpush3.msra.mxu1 %v9866_v58  ;;  %8984 = vmatprep.mubr.msk.f32.mxu1 %vm9274_vm0, %v9272_v0  ;;  %v10043_v58 = vand.u32 4294901760, %v10033_v19 }
 0x13f   : > { %8987 = vmatprep.subr.mxu1 %v9272_v0 }
 0x141   : > { %8985 = vmatmul.mubr.f32.vlgmr.msra.gmra.mrb[82].mxu1 %v9862_v56 }
 0x142   : > { %3289 = vmatmul.mubr.f32.vlgmr.msra.gmra.mrb[0].mxu0 %v9647_v43  ;;  %8988 = vmatpush3.msra.mxu1 %v9936_v18  ;;  %v9999_v43 = vpop.permute.xlu0 %7638 }
 0x143   : > { %3302 = vmatpush1.msra.mxu0 %v3068_v59  ;;  %3365 = vmatprep.mubr.f32.mxu0 %v9272_v0  ;;  %v7650_v49 = vsel %vm190_vm3, %v9999_v43, 0  ;;  %v4004_v59 = vand.u32 4294901760, %v4003_v36 }
 0x144   : > { %3374 = vmatprep.subr.mxu0 %v9827_v42  ;;  %8989 = vmatprep.mubr.msk.f32.mxu1 %vm9274_vm0, %v9272_v0  ;;  %v3996_v42 = vand.u32 4294901760, %v9992_v38  ;;  %v10017_v26 = vand.u32 4294901760, %v7650_v49 }
 0x145   : > { %8990 = vmatmul.mubr.f32.vlgmr.msra.gmra.mrb[84].mxu1 %v9981_v47  ;;  %8992 = vmatprep.subr.mxu1 %v9272_v0 }
 0x146   : > { %8993 = vmatpush3.msra.mxu1 %v7264_v31  ;;  %8994 = vmatprep.mubr.msk.f32.mxu1 %vm9274_vm0, %v9272_v0  ;;  %v3997_v41 = vsub.f32 %v9992_v38, %v3996_v42 }
 0x147   : > { %8997 = vmatprep.subr.mxu1 %v9272_v0 }
 0x148   : > { %v3998_v54 = vand.u32 4294901760, %v3997_v41 }
 0x149   : > { %8995 = vmatmul.mubr.f32.vlgmr.msra.gmra.mrb[86].mxu1 %v9933_v45 }
 0x14a   : > { %3367 = vmatmul.mubr.f32.vlgmr.msra.gmra.mrb[0].mxu0 %v9615_v32  ;;  %8998 = vmatpush3.msra.mxu1 %v9952_v6  ;;  %v4935_v6 = vsub.f32 %v4844_v46, %v10117_v8 }
 0x14b   : > { %3376 = vmatpush1.msra.mxu0 %v9855_v51  ;;  %3439 = vmatprep.mubr.f32.mxu0 %v9272_v0  ;;  %v8195_v51 = vsub.f32 %v7650_v49, %v10017_v26 }
 0x14c   : > { %3917 = vmatprep.subr.mxu0 %v9978_v29  ;;  %8999 = vmatprep.mubr.msk.f32.mxu1 %vm9274_vm0, %v9272_v0  ;;  %v4936_v31 = vand.u32 4294901760, %v4935_v6 }
 0x14d   : > { %9000 = vmatmul.mubr.f32.vlgmr.msra.gmra.mrb[88].mxu1 %v9946_v20  ;;  %9002 = vmatprep.subr.mxu1 %v9272_v0  ;;  %v8196_v15 = vand.u32 4294901760, %v8195_v51 }
 0x14e   : > { %9003 = vmatpush3.msra.mxu1 %v9936_v18  ;;  %9004 = vmatprep.mubr.msk.f32.mxu1 %vm9274_vm0, %v9272_v0 }
 0x14f   : > { %9007 = vmatprep.subr.mxu1 %v9272_v0  ;;  %v8197_v53 = vsub.f32 %v8195_v51, %v8196_v15 }
 0x151   : > { %9005 = vmatmul.mubr.f32.vlgmr.msra.gmra.mrb[90].mxu1 %v9957_v22  ;;  %v8198_v63 = vand.u32 4294901760, %v8197_v53 }
 0x152   : > { %3441 = vmatmul.mubr.f32.vlgmr.msra.gmra.mrb[0].mxu0 %v9615_v32  ;;  %9008 = vmatpush3.msra.mxu1 %v7262_v23  ;;  %v7722_v32 = vsub.f32 %v10033_v19, %v10043_v58 }
 0x153   : > { %3919 = vmatpush1.msra.mxu0 %v10006_v44  ;;  %3982 = vmatprep.mubr.f32.mxu0 %v9272_v0 }
 0x154   : > { %3999 = vmatprep.subr.mxu0 %v3998_v54  ;;  %9009 = vmatprep.mubr.msk.f32.mxu1 %vm9274_vm0, %v9272_v0  ;;  %v10062_v57 = vand.u32 4294901760, %v7722_v32 }
 0x155   : > { %9010 = vmatmul.mubr.f32.vlgmr.msra.gmra.mrb[92].mxu1 %v9933_v45  ;;  %9012 = vmatprep.subr.mxu1 %v9272_v0 }
 0x156   : > { %9013 = vmatpush3.msra.mxu1 %v9936_v18  ;;  %9014 = vmatprep.mubr.msk.f32.mxu1 %vm9274_vm0, %v9272_v0 }
 0x157   : > { %9017 = vmatprep.subr.mxu1 %v9272_v0 }
 0x159   : > { %9015 = vmatmul.mubr.f32.vlgmr.msra.gmra.mrb[94].mxu1 %v9933_v45 }
 0x15a   : > { %3988 = vmatmul.mubr.f32.vlgmr.msra.gmra.mrb[0].mxu0 %v9760_v21  ;;  %9018 = vmatpush3.msra.mxu1 %v10017_v26  ;;  %v8566_v21 = vld [vmem:[%s10288_s2] sm:$0xff] }
 0x15b   : > { %4005 = vmatpush1.msra.mxu0 %v4004_v59  ;;  %4068 = vmatprep.mubr.f32.mxu0 %v9272_v0 }
 0x15c   : > { %4078 = vmatprep.subr.mxu0 %v9992_v38  ;;  %9019 = vmatprep.mubr.msk.f32.mxu1 %vm9274_vm0, %v9272_v0 }
 0x15d   : > { %9020 = vmatmul.mubr.f32.vlgmr.msra.gmra.mrb[96].mxu1 %v10062_v57  ;;  %9022 = vmatprep.subr.mxu1 %v9272_v0 }
 0x15e   : > { %9023 = vmatpush3.msra.mxu1 %v8198_v63  ;;  %9024 = vmatprep.mubr.msk.f32.mxu1 %vm9274_vm0, %v9272_v0 }
 0x15f   : > { %9027 = vmatprep.subr.mxu1 %v9272_v0  ;;  %8569 = vperm.xlu0 %9206, %v8566_v21  }
 0x161   : > { %9025 = vmatmul.mubr.f32.vlgmr.msra.gmra.mrb[98].mxu1 %v10013_v50 }
 0x162   : > { %4070 = vmatmul.mubr.f32.vlgmr.msra.gmra.mrb[0].mxu0 %v9707_v62  ;;  %9028 = vmatpush3.msra.mxu1 %v8195_v51 }
 0x163   : > { %4081 = vmatpush1.msra.mxu0 %v10020_v33  ;;  %4144 = vmatprep.mubr.f32.mxu0 %v9272_v0 }
 0x164   : > { %4154 = vmatprep.subr.mxu0 %v9978_v29  ;;  %9029 = vmatprep.mubr.msk.f32.mxu1 %vm9274_vm0, %v9272_v0 }
 0x165   : > { %9030 = vmatmul.mubr.f32.vlgmr.msra.gmra.mrb[100].mxu1 %v10033_v19  ;;  %9032 = vmatprep.subr.mxu1 %v9272_v0 }
 0x166   : > { %9033 = vmatpush3.msra.mxu1 %v10017_v26  ;;  %9034 = vmatprep.mubr.msk.f32.mxu1 %vm9274_vm0, %v9272_v0 }
 0x167   : > { %9037 = vmatprep.subr.mxu1 %v9272_v0 }
 0x169   : > { %9035 = vmatmul.mubr.f32.vlgmr.msra.gmra.mrb[102].mxu1 %v10043_v58 }
 0x16a   : > { %4147 = vmatmul.mubr.f32.vlgmr.msra.gmra.mrb[0].mxu0 %v9727_v4  ;;  %9038 = vmatpush3.msra.mxu1 %v8196_v15  ;;  %v10106_v4 = vand.u32 4294901760, %v4846_v5 }
 0x16b   : > { %4156 = vmatpush1.msra.mxu0 %v10006_v44  ;;  %4219 = vmatprep.mubr.f32.mxu0 %v9272_v0  ;;  %v734_v3 = vpop.f32.mrb[0].mxu1 }
 0x16c   : > { %4232 = vmatprep.subr.mxu0 %v3996_v42  ;;  %9039 = vmatprep.mubr.msk.f32.mxu1 %vm9274_vm0, %v9272_v0  ;;  %v4929_v13 = vsub.f32 %v4846_v5, %v10106_v4  ;;  %v8781_v9 = vpop.f32.mrb[1].mxu1 }
 0x16d   : > { %9040 = vmatmul.mubr.f32.vlgmr.msra.gmra.mrb[104].mxu1 %v10013_v50  ;;  %9042 = vmatprep.subr.mxu1 %v9272_v0 }
 0x16e   : > { %9043 = vmatpush3.msra.mxu1 %v10017_v26  ;;  %9044 = vmatprep.mubr.msk.f32.mxu1 %vm9274_vm0, %v9272_v0  ;;  %v4930_v55 = vand.u32 4294901760, %v4929_v13 }
 0x170   : > { %v4931_v14 = vsub.f32 %v4929_v13, %v4930_v55 }
 0x171   : > { %9045 = vmatmul.mubr.f32.vlgmr.msra.gmra.mrb[106].mxu1 %v10013_v50 }
 0x172   : > { %4223 = vmatmul.mubr.f32.vlgmr.msra.gmra.mrb[0].mxu0 %v9741_v11  ;;  %v4932_v34 = vand.u32 4294901760, %v4931_v14 }
 0x173   : > { %4236 = vmatpush1.msra.mxu0 %v4002_v52  ;;  %4299 = vmatprep.mubr.f32.mxu0 %v9272_v0  ;;  %v810_v17 = vpop.f32.mrb[2].mxu1 }
 0x174   : > { %4308 = vmatprep.subr.mxu0 %v9978_v29  ;;  %v8786_v18 = vpop.f32.mrb[3].mxu1  ;;  %v811_v24 = vadd.f32 %v810_v17, %v734_v3  ;;  %v5780_v3 = vsel %vm190_vm3, %v9626_v37, 0 }
 0x175   : > { %v10137_v18 = vand.u32 4294901760, %v5780_v3 }
 0x178   : > { %v884_v11 = vpop.f32.mrb[4].mxu1 }
 0x179   : > { %v8791_v23 = vpop.f32.mrb[5].mxu1  ;;  %v885_v29 = vadd.f32 %v884_v11, %v811_v24 }
 0x17a   : > { %4301 = vmatmul.mubr.f32.vlgmr.msra.gmra.mrb[0].mxu0 %v9707_v62 }
 0x17b   : > { %4310 = vmatpush1.msra.mxu0 %v10006_v44  ;;  %4373 = vmatprep.mubr.f32.mxu0 %v9272_v0  ;;  %v4937_v44 = vsub.f32 %v4935_v6, %v4936_v31 }
 0x17c   : > { %4851 = vmatprep.subr.mxu0 %v10106_v4  ;;  %v958_v39 = vpop.f32.mrb[6].mxu1 }
 0x17d   : > { %v8796_v27 = vpop.f32.mrb[7].mxu1  ;;  %v959_v38 = vadd.f32 %v958_v39, %v885_v29  ;;  %v4938_v41 = vand.u32 4294901760, %v4937_v44 }
 0x180   : > { %v1032_v35 = vpop.f32.mrb[8].mxu1 }
 0x181   : > { %v8801_v12 = vpop.f32.mrb[9].mxu1  ;;  %v1033_v49 = vadd.f32 %v1032_v35, %v959_v38 }
 0x182   : > { %4375 = vmatmul.mubr.f32.vlgmr.msra.gmra.mrb[0].mxu0 %v9707_v62 }
 0x183   : > { %4853 = vmatpush1.msra.mxu0 %v10117_v8  ;;  %4916 = vmatprep.mubr.f32.mxu0 %v9272_v0 }
 0x184   : > { %4933 = vmatprep.subr.mxu0 %v4932_v34  ;;  %v1104_v42 = vpop.f32.mrb[10].mxu1 }
 0x185   : > { %v1105_v26 = vadd.f32 %v1104_v42, %v1033_v49  ;;  %v8806_v33 = vpop.f32.mrb[11].mxu1 }
 0x188   : > { %v1654_v51 = vpop.f32.mrb[12].mxu1 }
 0x189   : > { %v1655_v52 = vadd.f32 %v1654_v51, %v1105_v26  ;;  %v8811_v54 = vpop.f32.mrb[13].mxu1 }
 0x18a   : > { %4922 = vmatmul.mubr.f32.vlgmr.msra.gmra.mrb[0].mxu0 %v9833_v48 }
 0x18b   : > { %4939 = vmatpush1.msra.mxu0 %v4938_v41  ;;  %5002 = vmatprep.mubr.f32.mxu0 %v9272_v0 }
 0x18c   : > { %5012 = vmatprep.subr.mxu0 %v4929_v13  ;;  %v1730_v62 = vpop.f32.mrb[14].mxu1 }
 0x18d   : > { %v1731_v15 = vadd.f32 %v1730_v62, %v1655_v52  ;;  %v8816_v36 = vpop.f32.mrb[15].mxu1 }
 0x190   : > { %v1804_v32 = vpop.f32.mrb[16].mxu1 }
 0x191   : > { %v1805_v53 = vadd.f32 %v1804_v32, %v1731_v15  ;;  %v8821_v59 = vpop.f32.mrb[17].mxu1 }
 0x192   : > { %5004 = vmatmul.mubr.f32.vlgmr.msra.gmra.mrb[0].mxu0 %v9780_v25 }
 0x193   : > { %5015 = vmatpush1.msra.mxu0 %v4935_v6  ;;  %5078 = vmatprep.mubr.f32.mxu0 %v9272_v0 }
 0x194   : > { %5088 = vmatprep.subr.mxu0 %v10106_v4  ;;  %v1878_v63 = vpop.f32.mrb[18].mxu1 }
 0x195   : > { %v1879_v21 = vadd.f32 %v1878_v63, %v1805_v53  ;;  %v8826_v48 = vpop.f32.mrb[19].mxu1 }
 0x198   : > { %v1952_v1 = vpop.f32.mrb[20].mxu1 }
 0x199   : > { %v1953_v5 = vadd.f32 %v1952_v1, %v1879_v21  ;;  %v8831_v46 = vpop.f32.mrb[21].mxu1 }
 0x19a   : > { %5081 = vmatmul.mubr.f32.vlgmr.msra.gmra.mrb[0].mxu0 %v9793_v10  ;;  %v5863_v10 = vsub.f32 %v5780_v3, %v10137_v18  ;;  %v6708_v46 = vsel %vm6706_vm8, %v9704_v61, %v9922_v16 }
 0x19b   : > { %5090 = vmatpush1.msra.mxu0 %v10117_v8  ;;  %5153 = vmatprep.mubr.f32.mxu0 %v9272_v0  ;;  %v6714_v3 = vsel %vm190_vm3, %v6708_v46, 0 }
 0x19c   : > { %5166 = vmatprep.subr.mxu0 %v4930_v55  ;;  %v2024_v13 = vpop.f32.mrb[22].mxu1  ;;  %v5778_v55 = vsel %vm190_vm3, %v9636_v40, 0  ;;  %v5864_v39 = vand.u32 4294901760, %v5863_v10 }
 0x19d   : > { %v2025_v9 = vadd.f32 %v2024_v13, %v1953_v5  ;;  %v8836_v17 = vpop.f32.mrb[23].mxu1  ;;  %v10145_v24 = vand.u32 4294901760, %v5778_v55 }
 0x19e   : > { %v5865_v40 = vsub.f32 %v5863_v10, %v5864_v39 }
 0x1a0   : > { %v2585_v11 = vpop.f32.mrb[24].mxu1  ;;  %v5866_v12 = vand.u32 4294901760, %v5865_v40 }
 0x1a1   : > { %v8841_v6 = vpop.f32.mrb[25].mxu1 }
 0x1a2   : > { %5157 = vmatmul.mubr.f32.vlgmr.msra.gmra.mrb[0].mxu0 %v9804_v30  ;;  %v5869_v30 = vsub.f32 %v5778_v55, %v10145_v24  ;;  %v10167_v6 = vand.u32 4294901760, %v6714_v3 }
 0x1a3   : > { %5170 = vmatpush1.msra.mxu0 %v4936_v31  ;;  %5233 = vmatprep.mubr.f32.mxu0 %v9272_v0 }
 0x1a4   : > { %5242 = vmatprep.subr.mxu0 %v10106_v4  ;;  %v2661_v23 = vpop.f32.mrb[26].mxu1  ;;  %v5870_v35 = vand.u32 4294901760, %v5869_v30  ;;  %v10172_v61 = vsub.f32 %v6714_v3, %v10167_v6 }
 0x1a5   : > { %v2662_v37 = vadd.f32 %v2661_v23, %v2585_v11  ;;  %v8846_v14 = vpop.f32.mrb[27].mxu1 }
 0x1a8   : > { %v2735_v27 = vpop.f32.mrb[28].mxu1 }
 0x1a9   : > { %v2736_v29 = vadd.f32 %v2735_v27, %v2662_v37  ;;  %v8851_v34 = vpop.f32.mrb[29].mxu1 }
 0x1aa   : > { %5235 = vmatmul.mubr.f32.vlgmr.msra.gmra.mrb[0].mxu0 %v9780_v25 }
 0x1ab   : > { %5244 = vmatpush1.msra.mxu0 %v10117_v8  ;;  %5307 = vmatprep.mubr.f32.mxu0 %v9272_v0  ;;  %v5871_v8 = vsub.f32 %v5869_v30, %v5870_v35 }
 0x1ac   : > { %5785 = vmatprep.subr.mxu0 %v10137_v18  ;;  %v2809_v4 = vpop.f32.mrb[30].mxu1 }
 0x1ad   : > { %v2810_v31 = vadd.f32 %v2809_v4, %v2736_v29  ;;  %v8856_v38 = vpop.f32.mrb[31].mxu1  ;;  %v5872_v51 = vand.u32 4294901760, %v5871_v8 }
 0x1b0   : > { %v2883_v44 = vpop.f32.mrb[32].mxu1 }
 0x1b1   : > { %v2884_v49 = vadd.f32 %v2883_v44, %v2810_v31  ;;  %v8861_v42 = vpop.f32.mrb[33].mxu1 }
 0x1b2   : > { %5309 = vmatmul.mubr.f32.vlgmr.msra.gmra.mrb[0].mxu0 %v9780_v25 }
 0x1b3   : > { %5787 = vmatpush1.msra.mxu0 %v10145_v24  ;;  %5850 = vmatprep.mubr.f32.mxu0 %v9272_v0 }
 0x1b4   : > { %5867 = vmatprep.subr.mxu0 %v5866_v12  ;;  %v2955_v26 = vpop.f32.mrb[34].mxu1 }
 0x1b5   : > { %v2956_v33 = vadd.f32 %v2955_v26, %v2884_v49  ;;  %v8866_v41 = vpop.f32.mrb[35].mxu1 }
 0x1b7   : > { %v2961_v52 = vadd.f32 %v2956_v33, %v2025_v9 }
 0x1b8   : > { %v3519_v54 = vpop.f32.mrb[36].mxu1 }
 0x1b9   : > { %v8871_v62 = vpop.f32.mrb[37].mxu1 }
 0x1ba   : > { %5856 = vmatmul.mubr.f32.vlgmr.msra.gmra.mrb[0].mxu0 %v9911_v7 }
 0x1bb   : > { %5873 = vmatpush1.msra.mxu0 %v5872_v51  ;;  %5936 = vmatprep.mubr.f32.mxu0 %v9272_v0 }
 0x1bc   : > { %5946 = vmatprep.subr.mxu0 %v5863_v10  ;;  %v3595_v25 = vpop.f32.mrb[38].mxu1 }
 0x1bd   : > { %v3596_v15 = vadd.f32 %v3595_v25, %v3519_v54  ;;  %v8876_v36 = vpop.f32.mrb[39].mxu1 }
 0x1c0   : > { %v3669_v32 = vpop.f32.mrb[40].mxu1 }
 0x1c1   : > { %v3670_v53 = vadd.f32 %v3669_v32, %v3596_v15  ;;  %v8881_v59 = vpop.f32.mrb[41].mxu1  ;;  %v7637_v32 = vpop.permute.xlu1 %7636 }
 0x1c2   : > { %5938 = vmatmul.mubr.f32.vlgmr.msra.gmra.mrb[0].mxu0 %v9862_v56 }
 0x1c3   : > { %5949 = vmatpush1.msra.mxu0 %v5869_v30  ;;  %6012 = vmatprep.mubr.f32.mxu0 %v9272_v0 }
 0x1c4   : > { %6022 = vmatprep.subr.mxu0 %v10137_v18  ;;  %v3743_v63 = vpop.f32.mrb[42].mxu1 }
 0x1c5   : > { %v3744_v21 = vadd.f32 %v3743_v63, %v3670_v53  ;;  %v8886_v7 = vpop.f32.mrb[43].mxu1  ;;  %v7635_v46 = vpop.permute.xlu1 %7634 }
 0x1c8   : > { %v3817_v48 = vpop.f32.mrb[44].mxu1 }
 0x1c9   : > { %v3818_v1 = vadd.f32 %v3817_v48, %v3744_v21  ;;  %v8891_v5 = vpop.f32.mrb[45].mxu1  ;;  %v7642_v21 = vsel %vm7640_vm10, %v7637_v32, %v9999_v43 }
 0x1ca   : > { %6015 = vmatmul.mubr.f32.vlgmr.msra.gmra.mrb[0].mxu0 %v9882_v28  ;;  %v6712_v28 = vsel %vm190_vm3, %v9731_v2, 0  ;;  %v7648_v48 = vsel %vm190_vm3, %v7642_v21, 0 }
 0x1cb   : > { %6024 = vmatpush1.msra.mxu0 %v10145_v24  ;;  %6087 = vmatprep.mubr.f32.mxu0 %v9272_v0  ;;  %v10177_v14 = vand.u32 4294901760, %v6712_v28  ;;  %v10206_v3 = vand.u32 4294901760, %v7648_v48 }
 0x1cc   : > { %6100 = vmatprep.subr.mxu0 %v5864_v39  ;;  %v3889_v13 = vpop.f32.mrb[46].mxu1  ;;  %v6798_v39 = vand.u32 4294901760, %v10172_v61 }
 0x1cd   : > { %v3890_v9 = vadd.f32 %v3889_v13, %v3818_v1  ;;  %v8896_v17 = vpop.f32.mrb[47].mxu1  ;;  %v10182_v34 = vsub.f32 %v6712_v28, %v10177_v14  ;;  %v7731_v43 = vsub.f32 %v7648_v48, %v10206_v3 }
 0x1ce   : > { %v6799_v2 = vsub.f32 %v10172_v61, %v6798_v39 }
 0x1cf   : > { %v3895_v11 = vadd.f32 %v3890_v9, %v2961_v52  ;;  %v6804_v4 = vand.u32 4294901760, %v10182_v34 }
 0x1d0   : > { %v4453_v10 = vpop.f32.mrb[48].mxu1  ;;  %v6800_v31 = vand.u32 4294901760, %v6799_v2 }
 0x1d1   : > { %v8901_v55 = vpop.f32.mrb[49].mxu1 }
 0x1d2   : > { %6091 = vmatmul.mubr.f32.vlgmr.msra.gmra.mrb[0].mxu0 %v9892_v60 }
 0x1d3   : > { %6104 = vmatpush1.msra.mxu0 %v5870_v35  ;;  %6167 = vmatprep.mubr.f32.mxu0 %v9272_v0 }
 0x1d4   : > { %6176 = vmatprep.subr.mxu0 %v10137_v18  ;;  %v4529_v16 = vpop.f32.mrb[50].mxu1 }
 0x1d5   : > { %v4530_v23 = vadd.f32 %v4529_v16, %v4453_v10  ;;  %v8906_v37 = vpop.f32.mrb[51].mxu1  ;;  %v7732_v16 = vand.u32 4294901760, %v7731_v43 }
 0x1d8   : > { %v4603_v27 = vpop.f32.mrb[52].mxu1 }
 0x1d9   : > { %v4604_v60 = vadd.f32 %v4603_v27, %v4530_v23  ;;  %v8911_v29 = vpop.f32.mrb[53].mxu1 }
 0x1da   : > { %6169 = vmatmul.mubr.f32.vlgmr.msra.gmra.mrb[0].mxu0 %v9862_v56 }
 0x1db   : > { %6178 = vmatpush1.msra.mxu0 %v10145_v24  ;;  %6241 = vmatprep.mubr.f32.mxu0 %v9272_v0  ;;  %v6805_v24 = vsub.f32 %v10182_v34, %v6804_v4 }
 0x1dc   : > { %6719 = vmatprep.subr.mxu0 %v10167_v6  ;;  %v4677_v18 = vpop.f32.mrb[54].mxu1 }
 0x1dd   : > { %v4678_v30 = vadd.f32 %v4677_v18, %v4604_v60  ;;  %v8916_v40 = vpop.f32.mrb[55].mxu1  ;;  %v6806_v8 = vand.u32 4294901760, %v6805_v24 }
 0x1e0   : > { %v4751_v38 = vpop.f32.mrb[56].mxu1 }
 0x1e1   : > { %v4752_v35 = vadd.f32 %v4751_v38, %v4678_v30  ;;  %v8921_v12 = vpop.f32.mrb[57].mxu1 }
 0x1e2   : > { %6243 = vmatmul.mubr.f32.vlgmr.msra.gmra.mrb[0].mxu0 %v9862_v56 }
 0x1e3   : > { %6721 = vmatpush1.msra.mxu0 %v10177_v14  ;;  %6784 = vmatprep.mubr.f32.mxu0 %v9272_v0 }
 0x1e4   : > { %6801 = vmatprep.subr.mxu0 %v6800_v31  ;;  %v4823_v44 = vpop.f32.mrb[58].mxu1 }
 0x1e5   : > { %v4824_v49 = vadd.f32 %v4823_v44, %v4752_v35  ;;  %v8926_v42 = vpop.f32.mrb[59].mxu1 }
 0x1e7   : > { %v4829_v26 = vadd.f32 %v4824_v49, %v3895_v11 }
 0x1e8   : > { %v5387_v33 = vpop.f32.mrb[60].mxu1 }
 0x1e9   : > { %v8931_v41 = vpop.f32.mrb[61].mxu1 }
 0x1ea   : > { %6790 = vmatmul.mubr.f32.vlgmr.msra.gmra.mrb[0].mxu0 %v9981_v47 }
 0x1eb   : > { %6807 = vmatpush1.msra.mxu0 %v6806_v8  ;;  %6870 = vmatprep.mubr.f32.mxu0 %v9272_v0 }
 0x1ec   : > { %6880 = vmatprep.subr.mxu0 %v10172_v61  ;;  %v5463_v56 = vpop.f32.mrb[62].mxu1 }
 0x1ed   : > { %v5464_v51 = vadd.f32 %v5463_v56, %v5387_v33  ;;  %v8936_v52 = vpop.f32.mrb[63].mxu1 }
 0x1f0   : > { %v5537_v54 = vpop.f32.mrb[64].mxu1 }
 0x1f1   : > { %v5538_v62 = vadd.f32 %v5537_v54, %v5464_v51  ;;  %v8941_v25 = vpop.f32.mrb[65].mxu1 }
 0x1f2   : > { %6872 = vmatmul.mubr.f32.vlgmr.msra.gmra.mrb[0].mxu0 %v9933_v45 }
 0x1f3   : > { %6883 = vmatpush1.msra.mxu0 %v10182_v34  ;;  %6946 = vmatprep.mubr.f32.mxu0 %v9272_v0 }
 0x1f4   : > { %6956 = vmatprep.subr.mxu0 %v10167_v6  ;;  %v5611_v47 = vpop.f32.mrb[66].mxu1 }
 0x1f5   : > { %v5612_v15 = vadd.f32 %v5611_v47, %v5538_v62  ;;  %v8946_v36 = vpop.f32.mrb[67].mxu1 }
 0x1f8   : > { %v5685_v53 = vpop.f32.mrb[68].mxu1 }
 0x1f9   : > { %v5686_v59 = vadd.f32 %v5685_v53, %v5612_v15  ;;  %v8951_v63 = vpop.f32.mrb[69].mxu1 }
 0x1fa   : > { %6949 = vmatmul.mubr.f32.vlgmr.msra.gmra.mrb[0].mxu0 %v9946_v20  ;;  %v7641_v20 = vsel %vm7640_vm10, %v7635_v46, %v7637_v32 }
 0x1fb   : > { %6958 = vmatpush1.msra.mxu0 %v10177_v14  ;;  %7021 = vmatprep.mubr.f32.mxu0 %v9272_v0  ;;  %v7646_v11 = vsel %vm190_vm3, %v7641_v20, 0 }
 0x1fc   : > { %7034 = vmatprep.subr.mxu0 %v6798_v39  ;;  %v5757_v7 = vpop.f32.mrb[70].mxu1  ;;  %v10214_v28 = vand.u32 4294901760, %v7646_v11 }
 0x1fd   : > { %v5758_v1 = vadd.f32 %v5757_v7, %v5686_v59  ;;  %v8956_v5 = vpop.f32.mrb[71].mxu1 }
 0x1ff   : > { %v5763_v13 = vadd.f32 %v5758_v1, %v4829_v26 }
 0x200   : > { %v6321_v9 = vpop.f32.mrb[72].mxu1 }
 0x201   : > { %v8961_v17 = vpop.f32.mrb[73].mxu1 }
 0x202   : > { %7025 = vmatmul.mubr.f32.vlgmr.msra.gmra.mrb[0].mxu0 %v9957_v22  ;;  %v7737_v22 = vsub.f32 %v7646_v11, %v10214_v28  ;;  %v8570_v17 = vpop.permute.xlu0 %8569 }
 0x203   : > { %7038 = vmatpush1.msra.mxu0 %v6804_v4  ;;  %7101 = vmatprep.mubr.f32.mxu0 %v9272_v0 }
 0x204   : > { %7110 = vmatprep.subr.mxu0 %v10167_v6  ;;  %v6397_v10 = vpop.f32.mrb[74].mxu1  ;;  %v7733_v6 = vsub.f32 %v7731_v43, %v7732_v16  ;;  %v7738_v34 = vand.u32 4294901760, %v7737_v22 }
 0x205   : > { %v6398_v55 = vadd.f32 %v6397_v10, %v6321_v9  ;;  %v8966_v61 = vpop.f32.mrb[75].mxu1 }
 0x206   : > { %v7734_v2 = vand.u32 4294901760, %v7733_v6 }
 0x208   : > { %v6471_v23 = vpop.f32.mrb[76].mxu1 }
 0x209   : > { %v6472_v37 = vadd.f32 %v6471_v23, %v6398_v55  ;;  %v8971_v39 = vpop.f32.mrb[77].mxu1 }
 0x20a   : > { %7103 = vmatmul.mubr.f32.vlgmr.msra.gmra.mrb[0].mxu0 %v9933_v45 }
 0x20b   : > { %7112 = vmatpush1.msra.mxu0 %v10177_v14  ;;  %7175 = vmatprep.mubr.f32.mxu0 %v9272_v0  ;;  %v7739_v14 = vsub.f32 %v7737_v22, %v7738_v34 }
 0x20c   : > { %7653 = vmatprep.subr.mxu0 %v10206_v3  ;;  %v6545_v27 = vpop.f32.mrb[78].mxu1 }
 0x20d   : > { %v6546_v60 = vadd.f32 %v6545_v27, %v6472_v37  ;;  %v8976_v29 = vpop.f32.mrb[79].mxu1  ;;  %v7740_v35 = vand.u32 4294901760, %v7739_v14 }
 0x210   : > { %v6619_v18 = vpop.f32.mrb[80].mxu1 }
 0x211   : > { %v6620_v30 = vadd.f32 %v6619_v18, %v6546_v60  ;;  %v8981_v40 = vpop.f32.mrb[81].mxu1 }
 0x212   : > { %7177 = vmatmul.mubr.f32.vlgmr.msra.gmra.mrb[0].mxu0 %v9933_v45 }
 0x213   : > { %7655 = vmatpush1.msra.mxu0 %v10214_v28  ;;  %7718 = vmatprep.mubr.f32.mxu0 %v9272_v0 }
 0x214   : > { %7735 = vmatprep.subr.mxu0 %v7734_v2  ;;  %v6691_v4 = vpop.f32.mrb[82].mxu1 }
 0x215   : > { %v6692_v31 = vadd.f32 %v6691_v4, %v6620_v30  ;;  %v8986_v38 = vpop.f32.mrb[83].mxu1 }
 0x217   : > { %v6697_v12 = vadd.f32 %v6692_v31, %v5763_v13 }
 0x218   : > { %v7255_v24 = vpop.f32.mrb[84].mxu1 }
 0x219   : > { %v8991_v44 = vpop.f32.mrb[85].mxu1 }
 0x21a   : > { %7724 = vmatmul.mubr.f32.vlgmr.msra.gmra.mrb[0].mxu0 %v10062_v57 }
 0x21b   : > { %7741 = vmatpush1.msra.mxu0 %v7740_v35  ;;  %7804 = vmatprep.mubr.f32.mxu0 %v9272_v0 }
 0x21c   : > { %7814 = vmatprep.subr.mxu0 %v7731_v43  ;;  %v7331_v45 = vpop.f32.mrb[86].mxu1 }
 0x21d   : > { %v7332_v49 = vadd.f32 %v7331_v45, %v7255_v24  ;;  %v8996_v42 = vpop.f32.mrb[87].mxu1 }
 0x220   : > { %v7405_v8 = vpop.f32.mrb[88].mxu1 }
 0x221   : > { %v7406_v26 = vadd.f32 %v7405_v8, %v7332_v49  ;;  %v9001_v33 = vpop.f32.mrb[89].mxu1 }
 0x222   : > { %7806 = vmatmul.mubr.f32.vlgmr.msra.gmra.mrb[0].mxu0 %v10013_v50 }
 0x223   : > { %7817 = vmatpush1.msra.mxu0 %v7737_v22  ;;  %7880 = vmatprep.mubr.f32.mxu0 %v9272_v0 }
 0x224   : > { %7890 = vmatprep.subr.mxu0 %v10206_v3  ;;  %v7479_v41 = vpop.f32.mrb[90].mxu1 }
 0x225   : > { %v7480_v56 = vadd.f32 %v7479_v41, %v7406_v26  ;;  %v9006_v57 = vpop.f32.mrb[91].mxu1 }
 0x228   : > { %v7553_v51 = vpop.f32.mrb[92].mxu1 }
 0x229   : > { %v7554_v52 = vadd.f32 %v7553_v51, %v7480_v56  ;;  %v9011_v54 = vpop.f32.mrb[93].mxu1 }
 0x22a   : > { %7883 = vmatmul.mubr.f32.vlgmr.msra.gmra.mrb[0].mxu0 %v10033_v19 }
 0x22b   : > { %7892 = vmatpush1.msra.mxu0 %v10214_v28  ;;  %7955 = vmatprep.mubr.f32.mxu0 %v9272_v0 }
 0x22c   : > { %7968 = vmatprep.subr.mxu0 %v7732_v16  ;;  %v7625_v62 = vpop.f32.mrb[94].mxu1 }
 0x22d   : > { %v7626_v25 = vadd.f32 %v7625_v62, %v7554_v52  ;;  %v9016_v47 = vpop.f32.mrb[95].mxu1 }
 0x22f   : > { %v7631_v15 = vadd.f32 %v7626_v25, %v6697_v12 }
 0x230   : > { %v8189_v36 = vpop.f32.mrb[96].mxu1 }
 0x231   : > { %v9021_v32 = vpop.f32.mrb[97].mxu1 }
 0x232   : > { %7959 = vmatmul.mubr.f32.vlgmr.msra.gmra.mrb[0].mxu0 %v10043_v58 }
 0x233   : > { %7972 = vmatpush1.msra.mxu0 %v7738_v34  ;;  %8035 = vmatprep.mubr.f32.mxu0 %v9272_v0 }
 0x234   : > { %8044 = vmatprep.subr.mxu0 %v10206_v3  ;;  %v8265_v19 = vpop.f32.mrb[98].mxu1 }
 0x235   : > { %v8266_v53 = vadd.f32 %v8265_v19, %v8189_v36  ;;  %v9026_v59 = vpop.f32.mrb[99].mxu1 }
 0x238   : > { %v8339_v63 = vpop.f32.mrb[100].mxu1 }
 0x239   : > { %v8340_v21 = vadd.f32 %v8339_v63, %v8266_v53  ;;  %v9031_v7 = vpop.f32.mrb[101].mxu1 }
 0x23a   : > { %8037 = vmatmul.mubr.f32.vlgmr.msra.gmra.mrb[0].mxu0 %v10013_v50 }
 0x23b   : > { %8046 = vmatpush1.msra.mxu0 %v10214_v28  ;;  %8109 = vmatprep.mubr.f32.mxu0 %v9272_v0 }
 0x23c   : > { %v8413_v48 = vpop.f32.mrb[102].mxu1 }
 0x23d   : > { %v8414_v58 = vadd.f32 %v8413_v48, %v8340_v21  ;;  %v9036_v1 = vpop.f32.mrb[103].mxu1 }
 0x240   : > { %v8487_v5 = vpop.f32.mrb[104].mxu1 }
 0x241   : > { %v8488_v46 = vadd.f32 %v8487_v5, %v8414_v58  ;;  %v9041_v13 = vpop.f32.mrb[105].mxu1 }
 0x242   : > { %8111 = vmatmul.mubr.f32.vlgmr.msra.gmra.mrb[0].mxu0 %v10013_v50 }
 0x244   : > { %v8559_v3 = vpop.f32.mrb[106].mxu1 }
 0x245   : > { %v8560_v9 = vadd.f32 %v8559_v3, %v8488_v46  ;;  %v9046_v20 = vpop.f32.mrb[107].mxu1 }
 0x247   : > { %v8565_v43 = vadd.f32 %v8560_v9, %v7631_v15 }
 0x249   : > { %v8574_v11 = vadd.f32 %v8570_v17, %v8565_v43 }
 0x24b   : > { %8578 = vst.msk [vmem:[%s163_s20 + $0x10] sm:$0xff] %vm8577_vm11, %v8574_v11 }
 0x315   : > { %v8112_v0 = vpop.f32.mrb[0].mxu0 }
 0x316   : > { %v8572_v10 = vadd.f32 %v8570_v17, %v8112_v0  ;;  %v8114_v55 = vpop.f32.mrb[1].mxu0 }
 0x317   : > { %v8573_v61 = vadd.f32 %v8570_v17, %v8114_v55 }
 0x318   : > { %8575 = vst [vmem:[%s163_s20] sm:$0xff] %v8572_v10 }
 0x319   : > { %8576 = vst [vmem:[%s163_s20 + $0x8] sm:$0xff] %v8573_v61 }
 0x31a   : > { %9221 = shalt.err (!%p9218_p3)
}
 0x31b   : > { %s9222_s6 = scalar_lea.hbm %s10244_s28, 384  ;;  %s9226_s9 = scalar_lea.hbm %s10289_s3, 768 }
 0x31c   : > { %p9223_p4 = scmp.ne.s32.totalorder %s10244_s28, %s9222_s6  ;;  %p9227_p9 = scmp.lt.u32.totalorder %s10244_s28, %s10289_s3 }
 0x31d   : > { %p9228_p10 = scmp.lt.u32.totalorder %s9226_s9, %s9222_s6  ;;  %p9230_p12 = scmp.lt.u32.totalorder %s9222_s6, %s10244_s28 }
 0x31e   : > { %p9224_p7 = pnand %p9223_p4, %p9342_p5 }
 0x31f   : > { %p9229_p11 = por %p9228_p10, %p9227_p9 }
 0x320   : > { %p9225_p8 = pneg %p9224_p7 }
 0x321   : > { %p9231_p13 = por %p9230_p12, %p9229_p11 }
 0x323   : > { %p9232_p0 = pnand %p9231_p13, %p9225_p8 }
 0x325   : > { %9235 = shalt.err (!%p9232_p0)
}
 0x326   : > { %9156 = dma.vmem_to_hbm [thread:$0]  (%p9342_p5), %s10246_s25, 384, %s10244_s28, %s8580_s29  }
 0x327 PF: > { %p9162_p1 = scmp.ge.s32.totalorder %s9270_s15, 2  ;;  %s8606_s17 = sand.u32 1, %s9258_s12  }
 0x328   : > { %s8607_s19 = scalar_lea.sflag [#allocation3], %s8606_s17 }
 0x329   : > { %p9159_p2 = pnand %p9162_p1, %p9346_p6 }
 0x32b   : > { %9253 = dma.done.wait (!%p9159_p2), %s8607_s19, 384  }
 0x32c   : > { %9255 = vsyncadd (!%p9159_p2), %s8607_s19, 4294966912  ;;  %p13_p3 = scmp.ge.s32.totalorder %s9329_s18, 4   ;;  %s10292_s12 = smov %s9262_s13 }
 0x32d   : > { %s10293_s13 = smov %s9266_s14  ;;  %s10294_s14 = smov %s9340_s21 }
 0x32e   : > { %s10295_s15 = smov %s9329_s18  ;;  %15 = sbr.rel (!%p13_p3) target bundleno = 3 (0x3), region = 75 }
 0x335   :  { %8612 = vsyncpa [#allocation3], 1 }
 0x336   :  { %8614 = vsyncpa [#allocation3 + $0x1], 1 }

</bundles_post_ra>
